<compile_context>
chip_gen: v7x
topology: tpu7x:2x2x1
jax: 0.10.0
libtpu: 0.0.40
codegen_flags: <defaults>
</compile_context>

<pallas_src>
import functools

import jax
import jax.numpy as jnp
from jax import lax
from jax.experimental import pallas as pl
from jax.experimental.pallas import tpu as pltpu


# --------------------------------------------------------------------------- kernel
def _make_ab2_kernel(NBH, H, WC, k1, k2, h, mxu_dtype=jnp.bfloat16):
    """Fused kernel for one (NB*H, W*C) lane-dense row-block of the batch."""

    def kernel(yn_ref, fyn1_ref, bn_ref, w_ref, yn1_ref, fyn_ref):
        yn = yn_ref[...]          # (NBH, WC) f32
        fyn_1 = fyn1_ref[...]     # (NBH, WC) f32
        bn = bn_ref[...]          # (4, WC)   f32 : [bn1_scale, bn1_bias, bn2_scale, bn2_bias]

        # Row-validity masks for the vertical 3x3 halo: row r = nb*H + y. The rolled
        # neighbour row is only valid while it stays inside the same image; invalid
        # rows are zeroed, which reproduces padding=1 along y (and prevents any
        # cross-image / wrap-around contamination inside the block).
        r = lax.broadcasted_iota(jnp.int32, (NBH, 1), 0)
        y = r % H
        up_ok = y > 0            # row r-1 belongs to the same image
        dn_ok = y < (H - 1)      # row r+1 belongs to the same image

        def conv3x3(t, conv_idx):
            # t: (NBH, WC) f32. Vertical taps via XLU row rotations + masks
            # (pltpu.roll requires a non-negative shift: rotate by 1 for "row above",
            # by NBH-1 == -1 mod NBH for "row below"); horizontal taps + channel
            # mixing are folded into three banded (WC, WC) weights -> three dense
            # MXU matmuls, bf16 operands, f32 accumulation.
            t_m1 = jnp.where(up_ok, pltpu.roll(t, shift=1, axis=0), 0.0)        # t[r-1]
            t_p1 = jnp.where(dn_ok, pltpu.roll(t, shift=NBH - 1, axis=0), 0.0)  # t[r+1]
            acc = jnp.dot(t_m1.astype(mxu_dtype), w_ref[conv_idx, 0],
                          preferred_element_type=jnp.float32)
            acc = acc + jnp.dot(t.astype(mxu_dtype), w_ref[conv_idx, 1],
                                preferred_element_type=jnp.float32)
            acc = acc + jnp.dot(t_p1.astype(mxu_dtype), w_ref[conv_idx, 2],
                                preferred_element_type=jnp.float32)
            return acc

        # relu(bn_1(yn)) -> conv_1 -> relu(bn_2(.)) -> conv_2
        t1 = jnp.maximum(yn * bn[0:1, :] + bn[1:2, :], 0.0)
        c1 = conv3x3(t1, 0)
        t2 = jnp.maximum(c1 * bn[2:3, :] + bn[3:4, :], 0.0)
        fyn = conv3x3(t2, 1)

        # AB2 combination (identity downsamples).
        yn1_ref[...] = (k1 * h) * fyn + yn + k2 * fyn_1
        fyn_ref[...] = fyn

    return kernel


# ------------------------------------------------------------------ parameter prep
def _bn_inference_coeffs(gamma, beta, mean, var, eps=1e-5):
    scale = gamma / jnp.sqrt(var + eps)
    bias = beta - mean * scale
    return scale.astype(jnp.float32), bias.astype(jnp.float32)


def _conv3x3_band_weights(w, W):
    """PyTorch (Cout, Cin, 3, 3) conv weight -> 3 banded (W*C, W*C) matrices.

    M[ky][x_in*C + ci, x_out*C + co] = w[co, ci, ky, kx] with kx = x_in - x_out + 1,
    zero outside the band / past the image border (== padding=1 along x).
    """
    taps = jnp.transpose(w, (2, 3, 1, 0)).astype(jnp.float32)   # (ky, kx, Cin, Cout)
    mats = []
    for ky in range(3):
        m = None
        for kx in range(3):
            shift = jnp.eye(W, k=1 - kx, dtype=jnp.float32)     # S[x_in, x_out]
            blk = jnp.kron(shift, taps[ky, kx])
            m = blk if m is None else m + blk
        mats.append(m)
    return jnp.stack(mats)                                      # (3, W*C, W*C)


def _pick_nb(N, H, WC):
    """Largest divisor of N keeping the double-buffered image blocks <= ~4 MiB."""
    per_image = 4 * 2 * H * WC * 4          # 4 image arrays, 2 buffers, f32
    cap = max(1, (4 << 20) // per_image)
    nb = 1
    for d in range(1, N + 1):
        if N % d == 0 and d <= cap:
            nb = d
    return nb


# ------------------------------------------------------------------------- wrapper
@functools.partial(jax.jit, static_argnames=("k1", "k2", "h"))
def ab2_basic_block(yn_nchw, fyn1_nchw, params, k1=1.0, k2=1.0, h=1.0):
    """AB2BasicBlock forward (stride=1, inplanes==planes identity-downsample path)."""
    N, C, H, W = yn_nchw.shape
    WC = W * C

    # NCHW -> lane-dense (N*H, W*C). (In a full channels-last network these boundary
    # transposes disappear; they exist here only for PyTorch-layout parity.)
    yn = jnp.transpose(yn_nchw, (0, 2, 3, 1)).astype(jnp.float32).reshape(N * H, WC)
    fyn1 = jnp.transpose(fyn1_nchw, (0, 2, 3, 1)).astype(jnp.float32).reshape(N * H, WC)

    bn1s, bn1b = _bn_inference_coeffs(*params["bn1"])
    bn2s, bn2b = _bn_inference_coeffs(*params["bn2"])
    # Single lane-aligned coefficient buffer; per-channel values tiled across x.
    bn = jnp.stack([jnp.tile(bn1s, W), jnp.tile(bn1b, W),
                    jnp.tile(bn2s, W), jnp.tile(bn2b, W)], axis=0)        # (4, WC)

    w = jnp.stack([_conv3x3_band_weights(params["conv1_w"], W),
                   _conv3x3_band_weights(params["conv2_w"], W)],
                  axis=0).astype(jnp.bfloat16)                            # (2, 3, WC, WC)

    NB = _pick_nb(N, H, WC)
    NBH = NB * H
    grid = (N // NB,)

    img_spec = pl.BlockSpec((NBH, WC), lambda i: (i, 0))
    bn_spec = pl.BlockSpec((4, WC), lambda i: (0, 0))
    w_spec = pl.BlockSpec((2, 3, WC, WC), lambda i: (0, 0, 0, 0))

    flops = 2 * 3 * 2 * (N * H) * WC * WC                 # 2 convs x 3 banded matmuls
    bytes_accessed = 4 * N * H * WC * 4 + w.size * 2 + bn.size * 4

    vmem_limit = int(min(
        64 * 1024 * 1024,
        max(16 * 1024 * 1024,
            8 * (4 * NBH * WC * 4 + 2 * 3 * WC * WC * 2))))

    kernel = _make_ab2_kernel(NBH, H, WC, k1, k2, h)

    yn1, fyn = pl.pallas_call(
        kernel,
        out_shape=(jax.ShapeDtypeStruct((N * H, WC), jnp.float32),
                   jax.ShapeDtypeStruct((N * H, WC), jnp.float32)),
        grid_spec=pltpu.PrefetchScalarGridSpec(
            num_scalar_prefetch=0,
            grid=grid,
            in_specs=[img_spec, img_spec, bn_spec, w_spec],
            out_specs=[img_spec, img_spec],
        ),
        compiler_params=pltpu.CompilerParams(
            dimension_semantics=("parallel",),          # distinct output tiles per step
            vmem_limit_bytes=vmem_limit),
        cost_estimate=pl.CostEstimate(flops=flops, transcendentals=0,
                                      bytes_accessed=bytes_accessed),
    )(yn, fyn1, bn, w)

    # back to NCHW
    yn1 = jnp.transpose(yn1.reshape(N, H, W, C), (0, 3, 1, 2))
    fyn = jnp.transpose(fyn.reshape(N, H, W, C), (0, 3, 1, 2))
    return yn1, fyn


# ----------------------------------------------------------------------- reference
def _reference(yn, fyn1, params, k1, k2, h):
    """Pure-JAX (NCHW, f32 HIGHEST) reference for correctness checking."""
    def bn_relu(x, p):
        gamma, beta, mean, var = p
        s = gamma / jnp.sqrt(var + 1e-5)
        b = beta - mean * s
        return jnp.maximum(x * s[None, :, None, None] + b[None, :, None, None], 0.0)

    def conv3x3(x, w):
        return lax.conv_general_dilated(
            x, w, window_strides=(1, 1), padding=((1, 1), (1, 1)),
            dimension_numbers=("NCHW", "OIHW", "NCHW"),
            precision=lax.Precision.HIGHEST)

    t = conv3x3(bn_relu(yn, params["bn1"]), params["conv1_w"])
    fyn = conv3x3(bn_relu(t, params["bn2"]), params["conv2_w"])
    yn1 = k1 * h * fyn + yn + k2 * fyn1
    return yn1, fyn


if __name__ == "__main__":
    key = jax.random.PRNGKey(0)
    ks = jax.random.split(key, 12)

    # inplanes = planes = 8, stride = 1 -> identity downsamples; W*C = 128 (lane-dense).
    N, C, H, W = 8, 8, 16, 16
    k1, k2, h = 1.0, 1.0, 1.0

    yn = jax.random.normal(ks[0], (N, C, H, W), jnp.float32)
    fyn1 = jax.random.normal(ks[1], (N, C, H, W), jnp.float32)

    params = {
        "bn1": (1.0 + 0.1 * jax.random.normal(ks[2], (C,), jnp.float32),
                0.1 * jax.random.normal(ks[3], (C,), jnp.float32),
                0.1 * jax.random.normal(ks[4], (C,), jnp.float32),
                jnp.abs(jax.random.normal(ks[5], (C,), jnp.float32)) + 0.5),
        "bn2": (1.0 + 0.1 * jax.random.normal(ks[6], (C,), jnp.float32),
                0.1 * jax.random.normal(ks[7], (C,), jnp.float32),
                0.1 * jax.random.normal(ks[8], (C,), jnp.float32),
                jnp.abs(jax.random.normal(ks[9], (C,), jnp.float32)) + 0.5),
        "conv1_w": 0.1 * jax.random.normal(ks[10], (C, C, 3, 3), jnp.float32),
        "conv2_w": 0.1 * jax.random.normal(ks[11], (C, C, 3, 3), jnp.float32),
    }

    yn1, fyn = ab2_basic_block(yn, fyn1, params, k1=k1, k2=k2, h=h)
    jax.block_until_ready((yn1, fyn))

    ref_yn1, ref_fyn = _reference(yn, fyn1, params, k1, k2, h)
    # Tolerance accounts for bf16 MXU operands (f32 accumulation) vs the f32 reference.
    assert jnp.allclose(fyn, ref_fyn, atol=3e-2, rtol=3e-2), "fyn mismatch"
    assert jnp.allclose(yn1, ref_yn1, atol=3e-2, rtol=3e-2), "yn1 mismatch"

    print("KERNEL_OK")
</pallas_src>

<mosaic_0001>
module attributes {stable_mosaic.version = 11 : i64} {
  func.func @kernel(%arg0: i32, %arg1: memref<128x128xf32, #tpu.memory_space<vmem>>, %arg2: memref<128x128xf32, #tpu.memory_space<vmem>>, %arg3: memref<4x128xf32, #tpu.memory_space<vmem>>, %arg4: memref<2x3x128x128xbf16, #tpu.memory_space<vmem>>, %arg5: memref<128x128xf32, #tpu.memory_space<vmem>>, %arg6: memref<128x128xf32, #tpu.memory_space<vmem>>) attributes {dimension_semantics = [#tpu.dimension_semantics<parallel>], iteration_bounds = array<i64: 1>, scalar_prefetch = 0 : i64, scratch_operands = 0 : i64, tpu.core_type = #tpu.core_type<tc>, window_params = [{transform_indices = @transform_0, window_bounds = array<i64: 128, 128>}, {transform_indices = @transform_1, window_bounds = array<i64: 128, 128>}, {pipeline_mode = #tpu.pipeline_mode<synchronous>, transform_indices = @transform_2, window_bounds = array<i64: 4, 128>}, {pipeline_mode = #tpu.pipeline_mode<synchronous>, transform_indices = @transform_3, window_bounds = array<i64: 2, 3, 128, 128>}, {transform_indices = @transform_4, window_bounds = array<i64: 128, 128>}, {transform_indices = @transform_5, window_bounds = array<i64: 128, 128>}]} {
    %c0 = arith.constant 0 : index
    %c0_0 = arith.constant 0 : index
    %0 = vector.load %arg1[%c0, %c0_0] : memref<128x128xf32, #tpu.memory_space<vmem>>, vector<128x128xf32>
    %c0_1 = arith.constant 0 : index
    %c0_2 = arith.constant 0 : index
    %1 = vector.load %arg2[%c0_1, %c0_2] : memref<128x128xf32, #tpu.memory_space<vmem>>, vector<128x128xf32>
    %c0_3 = arith.constant 0 : index
    %c0_4 = arith.constant 0 : index
    %2 = vector.load %arg3[%c0_3, %c0_4] : memref<4x128xf32, #tpu.memory_space<vmem>>, vector<4x128xf32>
    %3 = tpu.iota {dimensions = array<i32: 0>} : vector<128x1xi32>
    %c16_i32 = arith.constant 16 : i32
    %c0_i32 = arith.constant 0 : i32
    %4 = arith.cmpi eq, %c16_i32, %c0_i32 : i32
    %c1_i32 = arith.constant 1 : i32
    %5 = arith.select %4, %c1_i32, %c16_i32 : i32
    %6 = vector.broadcast %5 : i32 to vector<128x1xi32>
    %7 = arith.remsi %3, %6 : vector<128x1xi32>
    %c0_i32_5 = arith.constant 0 : i32
    %8 = vector.broadcast %c0_i32_5 : i32 to vector<128x1xi32>
    %9 = arith.cmpi ne, %7, %8 : vector<128x1xi32>
    %c0_i32_6 = arith.constant 0 : i32
    %10 = vector.broadcast %c0_i32_6 : i32 to vector<128x1xi32>
    %11 = arith.cmpi slt, %7, %10 : vector<128x1xi32>
    %c0_i32_7 = arith.constant 0 : i32
    %12 = arith.cmpi slt, %5, %c0_i32_7 : i32
    %13 = vector.broadcast %12 : i1 to vector<128x1xi1>
    %14 = vector.broadcast %13 : vector<128x1xi1> to vector<128x1xi1>
    %15 = arith.xori %11, %14 : vector<128x1xi1>
    %16 = arith.andi %15, %9 : vector<128x1xi1>
    %17 = vector.broadcast %5 : i32 to vector<128x1xi32>
    %18 = arith.addi %7, %17 : vector<128x1xi32>
    %19 = arith.select %16, %18, %7 : vector<128x1xi1>, vector<128x1xi32>
    %c0_i32_8 = arith.constant 0 : i32
    %20 = vector.broadcast %c0_i32_8 : i32 to vector<128x1xi32>
    %21 = arith.cmpi sgt, %19, %20 : vector<128x1xi32>
    %c15_i32 = arith.constant 15 : i32
    %22 = vector.broadcast %c15_i32 : i32 to vector<128x1xi32>
    %23 = arith.cmpi slt, %19, %22 : vector<128x1xi32>
    %24 = vector.extract_strided_slice %2 {offsets = [0, 0], sizes = [1, 128], strides = [1, 1]} : vector<4x128xf32> to vector<1x128xf32>
    %25 = vector.broadcast %24 : vector<1x128xf32> to vector<128x128xf32>
    %26 = arith.mulf %0, %25 : vector<128x128xf32>
    %27 = vector.extract_strided_slice %2 {offsets = [1, 0], sizes = [1, 128], strides = [1, 1]} : vector<4x128xf32> to vector<1x128xf32>
    %28 = vector.broadcast %27 : vector<1x128xf32> to vector<128x128xf32>
    %29 = arith.addf %26, %28 : vector<128x128xf32>
    %cst = arith.constant 0.000000e+00 : f32
    %30 = vector.broadcast %cst : f32 to vector<128x128xf32>
    %31 = arith.maximumf %29, %30 : vector<128x128xf32>
    %c1_i32_9 = arith.constant 1 : i32
    %32 = tpu.dynamic_rotate %31 by %c1_i32_9 dim 0 : vector<128x128xf32>, i32 -> vector<128x128xf32>
    %cst_10 = arith.constant 0.000000e+00 : f32
    %33 = vector.shape_cast %21 : vector<128x1xi1> to vector<128x1xi1>
    %34 = vector.broadcast %33 : vector<128x1xi1> to vector<128x128xi1>
    %35 = vector.broadcast %cst_10 : f32 to vector<128x128xf32>
    %36 = arith.select %34, %32, %35 : vector<128x128xi1>, vector<128x128xf32>
    %c127_i32 = arith.constant 127 : i32
    %37 = tpu.dynamic_rotate %31 by %c127_i32 dim 0 : vector<128x128xf32>, i32 -> vector<128x128xf32>
    %cst_11 = arith.constant 0.000000e+00 : f32
    %38 = vector.shape_cast %23 : vector<128x1xi1> to vector<128x1xi1>
    %39 = vector.broadcast %38 : vector<128x1xi1> to vector<128x128xi1>
    %40 = vector.broadcast %cst_11 : f32 to vector<128x128xf32>
    %41 = arith.select %39, %37, %40 : vector<128x128xi1>, vector<128x128xf32>
    %42 = arith.truncf %36 : vector<128x128xf32> to vector<128x128xbf16>
    %c0_12 = arith.constant 0 : index
    %c0_13 = arith.constant 0 : index
    %c0_14 = arith.constant 0 : index
    %c0_15 = arith.constant 0 : index
    %43 = vector.load %arg4[%c0_12, %c0_13, %c0_14, %c0_15] : memref<2x3x128x128xbf16, #tpu.memory_space<vmem>>, vector<1x1x128x128xbf16>
    %44 = vector.shape_cast %43 : vector<1x1x128x128xbf16> to vector<128x128xbf16>
    %cst_16 = arith.constant dense<0.000000e+00> : vector<128x128xf32>
    %45 = tpu.matmul %42, %44, %cst_16 {dimension_numbers = #tpu.dot_dimension_numbers<[1], [0], [0], [1], [0, 0, 1, 1], [], []>} : vector<128x128xbf16>, vector<128x128xbf16>, vector<128x128xf32> -> vector<128x128xf32>
    %46 = arith.truncf %31 : vector<128x128xf32> to vector<128x128xbf16>
    %c0_17 = arith.constant 0 : index
    %c1 = arith.constant 1 : index
    %c0_18 = arith.constant 0 : index
    %c0_19 = arith.constant 0 : index
    %47 = vector.load %arg4[%c0_17, %c1, %c0_18, %c0_19] : memref<2x3x128x128xbf16, #tpu.memory_space<vmem>>, vector<1x1x128x128xbf16>
    %48 = vector.shape_cast %47 : vector<1x1x128x128xbf16> to vector<128x128xbf16>
    %cst_20 = arith.constant dense<0.000000e+00> : vector<128x128xf32>
    %49 = tpu.matmul %46, %48, %cst_20 {dimension_numbers = #tpu.dot_dimension_numbers<[1], [0], [0], [1], [0, 0, 1, 1], [], []>} : vector<128x128xbf16>, vector<128x128xbf16>, vector<128x128xf32> -> vector<128x128xf32>
    %50 = arith.addf %45, %49 : vector<128x128xf32>
    %51 = arith.truncf %41 : vector<128x128xf32> to vector<128x128xbf16>
    %c0_21 = arith.constant 0 : index
    %c2 = arith.constant 2 : index
    %c0_22 = arith.constant 0 : index
    %c0_23 = arith.constant 0 : index
    %52 = vector.load %arg4[%c0_21, %c2, %c0_22, %c0_23] : memref<2x3x128x128xbf16, #tpu.memory_space<vmem>>, vector<1x1x128x128xbf16>
    %53 = vector.shape_cast %52 : vector<1x1x128x128xbf16> to vector<128x128xbf16>
    %cst_24 = arith.constant dense<0.000000e+00> : vector<128x128xf32>
    %54 = tpu.matmul %51, %53, %cst_24 {dimension_numbers = #tpu.dot_dimension_numbers<[1], [0], [0], [1], [0, 0, 1, 1], [], []>} : vector<128x128xbf16>, vector<128x128xbf16>, vector<128x128xf32> -> vector<128x128xf32>
    %55 = arith.addf %50, %54 : vector<128x128xf32>
    %56 = vector.extract_strided_slice %2 {offsets = [2, 0], sizes = [1, 128], strides = [1, 1]} : vector<4x128xf32> to vector<1x128xf32>
    %57 = vector.broadcast %56 : vector<1x128xf32> to vector<128x128xf32>
    %58 = arith.mulf %55, %57 : vector<128x128xf32>
    %59 = vector.extract_strided_slice %2 {offsets = [3, 0], sizes = [1, 128], strides = [1, 1]} : vector<4x128xf32> to vector<1x128xf32>
    %60 = vector.broadcast %59 : vector<1x128xf32> to vector<128x128xf32>
    %61 = arith.addf %58, %60 : vector<128x128xf32>
    %cst_25 = arith.constant 0.000000e+00 : f32
    %62 = vector.broadcast %cst_25 : f32 to vector<128x128xf32>
    %63 = arith.maximumf %61, %62 : vector<128x128xf32>
    %c1_i32_26 = arith.constant 1 : i32
    %64 = tpu.dynamic_rotate %63 by %c1_i32_26 dim 0 : vector<128x128xf32>, i32 -> vector<128x128xf32>
    %cst_27 = arith.constant 0.000000e+00 : f32
    %65 = vector.shape_cast %21 : vector<128x1xi1> to vector<128x1xi1>
    %66 = vector.broadcast %65 : vector<128x1xi1> to vector<128x128xi1>
    %67 = vector.broadcast %cst_27 : f32 to vector<128x128xf32>
    %68 = arith.select %66, %64, %67 : vector<128x128xi1>, vector<128x128xf32>
    %c127_i32_28 = arith.constant 127 : i32
    %69 = tpu.dynamic_rotate %63 by %c127_i32_28 dim 0 : vector<128x128xf32>, i32 -> vector<128x128xf32>
    %cst_29 = arith.constant 0.000000e+00 : f32
    %70 = vector.shape_cast %23 : vector<128x1xi1> to vector<128x1xi1>
    %71 = vector.broadcast %70 : vector<128x1xi1> to vector<128x128xi1>
    %72 = vector.broadcast %cst_29 : f32 to vector<128x128xf32>
    %73 = arith.select %71, %69, %72 : vector<128x128xi1>, vector<128x128xf32>
    %74 = arith.truncf %68 : vector<128x128xf32> to vector<128x128xbf16>
    %c1_30 = arith.constant 1 : index
    %c0_31 = arith.constant 0 : index
    %c0_32 = arith.constant 0 : index
    %c0_33 = arith.constant 0 : index
    %75 = vector.load %arg4[%c1_30, %c0_31, %c0_32, %c0_33] : memref<2x3x128x128xbf16, #tpu.memory_space<vmem>>, vector<1x1x128x128xbf16>
    %76 = vector.shape_cast %75 : vector<1x1x128x128xbf16> to vector<128x128xbf16>
    %cst_34 = arith.constant dense<0.000000e+00> : vector<128x128xf32>
    %77 = tpu.matmul %74, %76, %cst_34 {dimension_numbers = #tpu.dot_dimension_numbers<[1], [0], [0], [1], [0, 0, 1, 1], [], []>} : vector<128x128xbf16>, vector<128x128xbf16>, vector<128x128xf32> -> vector<128x128xf32>
    %78 = arith.truncf %63 : vector<128x128xf32> to vector<128x128xbf16>
    %c1_35 = arith.constant 1 : index
    %c1_36 = arith.constant 1 : index
    %c0_37 = arith.constant 0 : index
    %c0_38 = arith.constant 0 : index
    %79 = vector.load %arg4[%c1_35, %c1_36, %c0_37, %c0_38] : memref<2x3x128x128xbf16, #tpu.memory_space<vmem>>, vector<1x1x128x128xbf16>
    %80 = vector.shape_cast %79 : vector<1x1x128x128xbf16> to vector<128x128xbf16>
    %cst_39 = arith.constant dense<0.000000e+00> : vector<128x128xf32>
    %81 = tpu.matmul %78, %80, %cst_39 {dimension_numbers = #tpu.dot_dimension_numbers<[1], [0], [0], [1], [0, 0, 1, 1], [], []>} : vector<128x128xbf16>, vector<128x128xbf16>, vector<128x128xf32> -> vector<128x128xf32>
    %82 = arith.addf %77, %81 : vector<128x128xf32>
    %83 = arith.truncf %73 : vector<128x128xf32> to vector<128x128xbf16>
    %c1_40 = arith.constant 1 : index
    %c2_41 = arith.constant 2 : index
    %c0_42 = arith.constant 0 : index
    %c0_43 = arith.constant 0 : index
    %84 = vector.load %arg4[%c1_40, %c2_41, %c0_42, %c0_43] : memref<2x3x128x128xbf16, #tpu.memory_space<vmem>>, vector<1x1x128x128xbf16>
    %85 = vector.shape_cast %84 : vector<1x1x128x128xbf16> to vector<128x128xbf16>
    %cst_44 = arith.constant dense<0.000000e+00> : vector<128x128xf32>
    %86 = tpu.matmul %83, %85, %cst_44 {dimension_numbers = #tpu.dot_dimension_numbers<[1], [0], [0], [1], [0, 0, 1, 1], [], []>} : vector<128x128xbf16>, vector<128x128xbf16>, vector<128x128xf32> -> vector<128x128xf32>
    %87 = arith.addf %82, %86 : vector<128x128xf32>
    %cst_45 = arith.constant 1.000000e+00 : f32
    %88 = vector.broadcast %cst_45 : f32 to vector<128x128xf32>
    %89 = arith.mulf %88, %87 : vector<128x128xf32>
    %90 = arith.addf %89, %0 : vector<128x128xf32>
    %cst_46 = arith.constant 1.000000e+00 : f32
    %91 = vector.broadcast %cst_46 : f32 to vector<128x128xf32>
    %92 = arith.mulf %91, %1 : vector<128x128xf32>
    %93 = arith.addf %90, %92 : vector<128x128xf32>
    %c0_47 = arith.constant 0 : index
    %c0_48 = arith.constant 0 : index
    %94 = vector.load %arg5[%c0_47, %c0_48] : memref<128x128xf32, #tpu.memory_space<vmem>>, vector<128x128xf32>
    tpu.vector_store %arg5[%c0_47, %c0_48], %93 {strides = array<i32>} : memref<128x128xf32, #tpu.memory_space<vmem>>, vector<128x128xf32>,
    %c0_49 = arith.constant 0 : index
    %c0_50 = arith.constant 0 : index
    %95 = vector.load %arg6[%c0_49, %c0_50] : memref<128x128xf32, #tpu.memory_space<vmem>>, vector<128x128xf32>
    tpu.vector_store %arg6[%c0_49, %c0_50], %87 {strides = array<i32>} : memref<128x128xf32, #tpu.memory_space<vmem>>, vector<128x128xf32>,
    return
  }
  func.func @transform_0(%arg0: i32) -> (i32, i32) {
    %c0_i32 = arith.constant 0 : i32
    %c0_i32_0 = arith.constant 0 : i32
    return %arg0, %c0_i32 : i32, i32
  }
  func.func @transform_1(%arg0: i32) -> (i32, i32) {
    %c0_i32 = arith.constant 0 : i32
    %c0_i32_0 = arith.constant 0 : i32
    return %arg0, %c0_i32 : i32, i32
  }
  func.func @transform_2(%arg0: i32) -> (i32, i32) {
    %c0_i32 = arith.constant 0 : i32
    %c0_i32_0 = arith.constant 0 : i32
    %c0_i32_1 = arith.constant 0 : i32
    return %c0_i32, %c0_i32_0 : i32, i32
  }
  func.func @transform_3(%arg0: i32) -> (i32, i32, i32, i32) {
    %c0_i32 = arith.constant 0 : i32
    %c0_i32_0 = arith.constant 0 : i32
    %c0_i32_1 = arith.constant 0 : i32
    %c0_i32_2 = arith.constant 0 : i32
    %c0_i32_3 = arith.constant 0 : i32
    return %c0_i32, %c0_i32_0, %c0_i32_1, %c0_i32_2 : i32, i32, i32, i32
  }
  func.func @transform_4(%arg0: i32) -> (i32, i32) {
    %c0_i32 = arith.constant 0 : i32
    %c0_i32_0 = arith.constant 0 : i32
    return %arg0, %c0_i32 : i32, i32
  }
  func.func @transform_5(%arg0: i32) -> (i32, i32) {
    %c0_i32 = arith.constant 0 : i32
    %c0_i32_0 = arith.constant 0 : i32
    return %arg0, %c0_i32 : i32, i32
  }
}

</mosaic_0001>

<bundles_post_ra>
// kernel: tile.23
= control target key start
LH: loop header
LB: loop body
LE: loop exit
PB: predicated region body
PF: predicated region fallthrough
CT: control target
= control target key end

     0   :  { %s28_s0 = inlined_call_operand.vmem [shape: f32[8], index: 0, kind: input, shape index: {}]   ;;  %s29_s1 = inlined_call_operand.vmem [shape: f32[16,8], index: 1, kind: output, shape index: {}]  }
   0x1   :  { %v4_v0 = vld [vmem:[%s28_s0] ss:$0 sm:$0xff] }
   0x2   :  { %5 = vst [vmem:[%s29_s1] sm:$0xff] %v4_v0  ;;  %8 = vst [vmem:[%s29_s1 + $0x8] sm:$0xff] %v4_v0 }

// kernel: tile.36
= control target key start
LH: loop header
LB: loop body
LE: loop exit
PB: predicated region body
PF: predicated region fallthrough
CT: control target
= control target key end

     0   :  { %s131_s10 = smov 120   ;;  %s132_s11 = smov 104   ;;  %vm3_vm0 = vcmask 64512   ;;  %vm9_vm1 = vcmask 1048512   ;;  %vm15_vm2 = vcmask 982912   ;;  %vm21_vm3 = vcmask 917312   ;;  %s207_s0 = inlined_call_operand.vmem [shape: f32[16,8], index: 0, kind: input, shape index: {}]   ;;  %s208_s1 = inlined_call_operand.vmem [shape: f32[1,128], index: 1, kind: output, shape index: {}]  }
   0x1   :  { %v101_v0 = vld [vmem:[%s207_s0 + $0xf] sm:$0x1]   ;;  %v103_v1 = vld [vmem:[%s207_s0 + $0xd] sm:$0x1]   ;;  %v102_v2 = vld [vmem:[%s207_s0 + $0xe] sm:$0x1]  }
   0x2   :  { %7 = vrot.lane.b32.xlu0 %v101_v0, %s131_s10  ;;  %19 = vrot.lane.b32.xlu1 %v103_v1, %s132_s11  ;;  %v104_v3 = vld [vmem:[%s207_s0 + $0xc] sm:$0x1]   ;;  %s133_s16 = smov 112   ;;  %s134_s17 = smov 96   ;;  %v105_v4 = vld [vmem:[%s207_s0 + $0xb] sm:$0x1]  }
   0x3   :  { %v106_v5 = vld [vmem:[%s207_s0 + $0xa] sm:$0x1]   ;;  %v2_v6 = vld [vmem:[%s207_s0] sm:$0x1]   ;;  %s135_s24 = smov 88   ;;  %s136_s25 = smov 80  }
   0x4   :  { %4 = vst.msk [vmem:[#allocation0] sm:$0x1] %vm3_vm0, %v2_v6   ;;  %v107_v7 = vld [vmem:[%s207_s0 + $0x9] sm:$0x1]   ;;  %v108_v8 = vld [vmem:[%s207_s0 + $0x8] sm:$0x1]  }
   0x5   :  { %s137_s30 = smov 72   ;;  %s138_s2 = smov 64   ;;  %v109_v9 = vld [vmem:[%s207_s0 + $0x7] sm:$0x1]   ;;  %v110_v10 = vld [vmem:[%s207_s0 + $0x6] sm:$0x1]  }
   0x6   :  { %13 = vrot.lane.b32.xlu0 %v102_v2, %s133_s16  ;;  %25 = vrot.lane.b32.xlu1 %v104_v3, %s134_s17  ;;  %s139_s7 = smov 56   ;;  %s140_s8 = smov 48   ;;  %v111_v11 = vld [vmem:[%s207_s0 + $0x5] sm:$0x1]   ;;  %v112_v12 = vld [vmem:[%s207_s0 + $0x4] sm:$0x1]  }
   0x7   :  { %s141_s13 = smov 40   ;;  %s142_s14 = smov 32   ;;  %v113_v13 = vld [vmem:[%s207_s0 + $0x3] sm:$0x1]   ;;  %v114_v14 = vld [vmem:[%s207_s0 + $0x2] sm:$0x1]  }
   0x8   :  { %s143_s19 = smov 24   ;;  %s144_s20 = smov 16   ;;  %v115_v15 = vld [vmem:[%s207_s0 + $0x1] sm:$0x1]   ;;  %vm27_vm4 = vcmask 851712   ;;  %vm33_vm5 = vcmask 786112  }
   0x9   :  { %s145_s0 = smov 8   ;;  %vm39_vm6 = vcmask 720512   ;;  %vm45_vm7 = vcmask 654912   ;;  %vm51_vm8 = vcmask 589312   ;;  %vm57_vm9 = vcmask 523712  }
   0xa   :  { %31 = vrot.lane.b32.xlu0 %v105_v4, %s135_s24  ;;  %37 = vrot.lane.b32.xlu1 %v106_v5, %s136_s25  ;;  %vm63_vm10 = vcmask 458112   ;;  %vm69_vm11 = vcmask 392512   ;;  %vm75_vm12 = vcmask 326912   ;;  %vm81_vm13 = vcmask 261312  }
   0xb   :  { %vm87_vm14 = vcmask 195712   ;;  %vm93_vm15 = vcmask 130112  }
   0xe   :  { %43 = vrot.lane.b32.xlu0 %v107_v7, %s137_s30  ;;  %49 = vrot.lane.b32.xlu1 %v108_v8, %s138_s2 }
  0x12   :  { %55 = vrot.lane.b32.xlu0 %v109_v9, %s139_s7  ;;  %61 = vrot.lane.b32.xlu1 %v110_v10, %s140_s8 }
  0x16   :  { %67 = vrot.lane.b32.xlu0 %v111_v11, %s141_s13  ;;  %73 = vrot.lane.b32.xlu1 %v112_v12, %s142_s14 }
  0x1a   :  { %79 = vrot.lane.b32.xlu0 %v113_v13, %s143_s19  ;;  %85 = vrot.lane.b32.xlu1 %v114_v14, %s144_s20 }
  0x1e   :  { %91 = vrot.lane.b32.xlu0 %v115_v15, %s145_s0 }
  0x74   :  { %v8_v16 = vpop.permute.xlu0 %7   ;;  %v20_v17 = vpop.permute.xlu1 %19  }
  0x75   :  { %10 = vst.msk [vmem:[#allocation0] sm:$0x1] %vm9_vm1, %v8_v16  }
  0x78   :  { %v14_v18 = vpop.permute.xlu0 %13   ;;  %v26_v19 = vpop.permute.xlu1 %25  }
  0x79   :  { %16 = vst.msk [vmem:[#allocation0] sm:$0x1] %vm15_vm2, %v14_v18  }
  0x7a   :  { %22 = vst.msk [vmem:[#allocation0] sm:$0x1] %vm21_vm3, %v20_v17  }
  0x7b   :  { %28 = vst.msk [vmem:[#allocation0] sm:$0x1] %vm27_vm4, %v26_v19  }
  0x7c   :  { %v32_v20 = vpop.permute.xlu0 %31   ;;  %v38_v21 = vpop.permute.xlu1 %37  }
  0x7d   :  { %34 = vst.msk [vmem:[#allocation0] sm:$0x1] %vm33_vm5, %v32_v20  }
  0x7e   :  { %40 = vst.msk [vmem:[#allocation0] sm:$0x1] %vm39_vm6, %v38_v21  }
  0x80   :  { %v44_v22 = vpop.permute.xlu0 %43   ;;  %v50_v23 = vpop.permute.xlu1 %49  }
  0x81   :  { %46 = vst.msk [vmem:[#allocation0] sm:$0x1] %vm45_vm7, %v44_v22  }
  0x82   :  { %52 = vst.msk [vmem:[#allocation0] sm:$0x1] %vm51_vm8, %v50_v23  }
  0x84   :  { %v56_v24 = vpop.permute.xlu0 %55   ;;  %v62_v25 = vpop.permute.xlu1 %61  }
  0x85   :  { %58 = vst.msk [vmem:[#allocation0] sm:$0x1] %vm57_vm9, %v56_v24  }
  0x86   :  { %64 = vst.msk [vmem:[#allocation0] sm:$0x1] %vm63_vm10, %v62_v25  }
  0x88   :  { %v68_v26 = vpop.permute.xlu0 %67   ;;  %v74_v27 = vpop.permute.xlu1 %73  }
  0x89   :  { %70 = vst.msk [vmem:[#allocation0] sm:$0x1] %vm69_vm11, %v68_v26  }
  0x8a   :  { %76 = vst.msk [vmem:[#allocation0] sm:$0x1] %vm75_vm12, %v74_v27  }
  0x8c   :  { %v80_v28 = vpop.permute.xlu0 %79   ;;  %v86_v29 = vpop.permute.xlu1 %85  }
  0x8d   :  { %82 = vst.msk [vmem:[#allocation0] sm:$0x1] %vm81_vm13, %v80_v28  }
  0x8e   :  { %88 = vst.msk [vmem:[#allocation0] sm:$0x1] %vm87_vm14, %v86_v29  }
  0x90   :  { %v92_v30 = vpop.permute.xlu0 %91  }
  0x91   :  { %94 = vst.msk [vmem:[#allocation0] sm:$0x1] %vm93_vm15, %v92_v30  }
  0x98   :  { %v98_v31 = vld [vmem:[#allocation0] sm:$0x1] }
  0x99   :  { %100 = vst [vmem:[%s208_s1] sm:$0x1] %v98_v31 }

// kernel: ab2_basic_block.1
= control target key start
LH: loop header
LB: loop body
LE: loop exit
PB: predicated region body
PF: predicated region fallthrough
CT: control target
= control target key end

     0   :  { %v53_v0 = vlaneseq  ;;  %vm2428_vm3 = vmmov 1   ;;  %s3475_s3 = inlined_call_operand.vmem [shape: bf16[2,3,128,128], index: 3, kind: input, shape index: {}]   ;;  %s3476_s0 = inlined_call_operand.vmem [shape: f32[128,128], index: 0, kind: input, shape index: {}]   ;;  %s3477_s2 = inlined_call_operand.vmem [shape: f32[4,128], index: 2, kind: input, shape index: {}]   ;;  %s3478_s1 = inlined_call_operand.vmem [shape: f32[128,128], index: 1, kind: input, shape index: {}]   ;;  %s3479_s5 = inlined_call_operand.vmem [shape: f32[128,128], index: 5, kind: output, shape index: {1}]   ;;  %s3480_s4 = inlined_call_operand.vmem [shape: f32[128,128], index: 4, kind: output, shape index: {0}]  }
   0x1   :  { %v2364_v1 = vld [vmem:[%s3475_s3 + $0x40] sm:$0xff]   ;;  %v2365_v2 = vld [vmem:[%s3475_s3 + $0x48] sm:$0xff]   ;;  %v2366_v4 = vld [vmem:[%s3475_s3 + $0x50] sm:$0xff]  }
   0x2   :  { %v2465_v3 = vshrl.u32 %v53_v0, 7  ;;  %2107 = vmatprep.subr.bf16.mxu0 %v2364_v1  ;;  %v2367_v7 = vld [vmem:[%s3475_s3 + $0x58] sm:$0xff]   ;;  %v20_v8 = vld [vmem:[%s3476_s0] sm:$0xff]  ;;  %v21_v9 = vld [vmem:[%s3476_s0 + $0x8] sm:$0xff] }
   0x3   :  { %2108 = vmatpush3.bf16.msra.mxu0 %v2364_v1  ;;  %v2484_v10 = vld [vmem:[%s3477_s2] sm:$0xf]  ;;  %v2369_v18 = vld [vmem:[%s3475_s3 + $0x68] sm:$0xff]   ;;  %v22_v21 = vld [vmem:[%s3476_s0 + $0x10] sm:$0xff] }
   0x4   :  { %2109 = vmatprep.subr.bf16.mxu0 %v2365_v2  ;;  %v296_v5 = vsub.s32 0, %v2465_v3  ;;  %v316_v6 = vsub.s32 1, %v2465_v3  ;;  %v2368_v15 = vld [vmem:[%s3475_s3 + $0x60] sm:$0xff]   ;;  %v23_v22 = vld [vmem:[%s3476_s0 + $0x18] sm:$0xff]  ;;  %v25_v24 = vld [vmem:[%s3476_s0 + $0x28] sm:$0xff]  ;;  %vm3485_vm0 = vcmp.lt.s32.totalorder %v2465_v3, 7 }
   0x5   :  { %v24_v23 = vld [vmem:[%s3476_s0 + $0x20] sm:$0xff]  ;;  %v2370_v30 = vld [vmem:[%s3475_s3 + $0x70] sm:$0xff]   ;;  %v2371_v32 = vld [vmem:[%s3475_s3 + $0x78] sm:$0xff]   ;;  %vm3481_vm1 = vcmp.lt.s32.totalorder %v2465_v3, 1 }
   0x6   :  { %v2487_v11 = vrot.slane %v2484_v10, %v296_v5  ;;  %v2490_v12 = vrot.slane %v2484_v10, %v316_v6  ;;  %v26_v31 = vld [vmem:[%s3476_s0 + $0x30] sm:$0xff]  ;;  %v27_v35 = vld [vmem:[%s3476_s0 + $0x38] sm:$0xff]  ;;  %v28_v38 = vld [vmem:[%s3476_s0 + $0x40] sm:$0xff] }
   0x7   :  { %2110 = vmatpush3.bf16.msra.mxu0 %v2365_v2  ;;  %v29_v39 = vld [vmem:[%s3476_s0 + $0x48] sm:$0xff]  ;;  %v2372_v48 = vld [vmem:[%s3475_s3] sm:$0xff]   ;;  %v30_v49 = vld [vmem:[%s3476_s0 + $0x50] sm:$0xff] }
   0x8   :  { %2111 = vmatprep.subr.bf16.mxu0 %v2366_v4  ;;  %v298_v13 = vmul.f32 %v2487_v11, %v20_v8  ;;  %v299_v14 = vmul.f32 %v2487_v11, %v21_v9  ;;  %v300_v26 = vmul.f32 %v2487_v11, %v22_v21  ;;  %v301_v27 = vmul.f32 %v2487_v11, %v23_v22  ;;  %v2373_v51 = vld [vmem:[%s3475_s3 + $0x8] sm:$0xff]   ;;  %v31_v54 = vld [vmem:[%s3476_s0 + $0x58] sm:$0xff]  ;;  %v32_v58 = vld [vmem:[%s3476_s0 + $0x60] sm:$0xff] }
   0x9   :  { %v302_v28 = vmul.f32 %v2487_v11, %v24_v23  ;;  %v303_v29 = vmul.f32 %v2487_v11, %v25_v24  ;;  %v304_v42 = vmul.f32 %v2487_v11, %v26_v31  ;;  %v305_v43 = vmul.f32 %v2487_v11, %v27_v35  ;;  %v33_v59 = vld [vmem:[%s3476_s0 + $0x68] sm:$0xff]  ;;  %v2388_v61 = vld [vmem:[%s3475_s3 + $0x100] sm:$0xff]   ;;  %v2374_v2 = vld [vmem:[%s3475_s3 + $0x10] sm:$0xff]  }
   0xa   :  { %v318_v16 = vadd.f32 %v2490_v12, %v298_v13  ;;  %v319_v17 = vadd.f32 %v2490_v12, %v299_v14  ;;  %v320_v33 = vadd.f32 %v2490_v12, %v300_v26  ;;  %v321_v34 = vadd.f32 %v2490_v12, %v301_v27  ;;  %v2389_v1 = vld [vmem:[%s3475_s3 + $0x108] sm:$0xff]   ;;  %v35_v8 = vld [vmem:[%s3476_s0 + $0x78] sm:$0xff]  ;;  %2203 = vmatprep.subr.bf16.mxu1 %v2388_v61  ;;  %v2390_v21 = vld [vmem:[%s3475_s3 + $0x110] sm:$0xff]  }
   0xb   :  { %2112 = vmatpush3.bf16.msra.mxu0 %v2366_v4  ;;  %v322_v36 = vadd.f32 %v2490_v12, %v302_v28  ;;  %v323_v37 = vadd.f32 %v2490_v12, %v303_v29  ;;  %v306_v46 = vmul.f32 %v2487_v11, %v28_v38  ;;  %v307_v47 = vmul.f32 %v2487_v11, %v29_v39  ;;  %v2375_v26 = vld [vmem:[%s3475_s3 + $0x18] sm:$0xff]  }
   0xc   :  { %2113 = vmatprep.subr.bf16.mxu0 %v2367_v7  ;;  %v2502_v19 = vmax.f32 %v318_v16, 0.0  ;;  %v2504_v20 = vmax.f32 %v319_v17, 0.0  ;;  %v2546_v40 = vmax.f32 %v320_v33, 0.0  ;;  %v2548_v41 = vmax.f32 %v321_v34, 0.0  ;;  %2204 = vmatpush3.bf16.msra.mxu1 %v2388_v61  ;;  %v34_v17 = vld [vmem:[%s3476_s0 + $0x70] sm:$0xff] }
   0xd   :  { %v2552_v44 = vmax.f32 %v322_v36, 0.0  ;;  %v2554_v45 = vmax.f32 %v323_v37, 0.0  ;;  %v324_v52 = vadd.f32 %v2490_v12, %v304_v42  ;;  %v325_v53 = vadd.f32 %v2490_v12, %v305_v43  ;;  %2205 = vmatprep.subr.bf16.mxu1 %v2389_v1  ;;  %v2376_v36 = vld [vmem:[%s3475_s3 + $0x20] sm:$0xff]  }
   0xe   :  { %v536_v25 = vpack.c.bf16 %v2504_v20, %v2502_v19  ;;  %v537_v50 = vpack.c.bf16 %v2548_v41, %v2546_v40  ;;  %v326_v56 = vadd.f32 %v2490_v12, %v306_v46  ;;  %v327_v57 = vadd.f32 %v2490_v12, %v307_v47  ;;  %v2392_v42 = vld [vmem:[%s3475_s3 + $0x120] sm:$0xff]  }
   0xf   :  { %2114 = vmatpush3.bf16.msra.mxu0 %v2367_v7  ;;  %v538_v55 = vpack.c.bf16 %v2554_v45, %v2552_v44  ;;  %v308_v60 = vmul.f32 %v2487_v11, %v30_v49  ;;  %v2588_v62 = vmax.f32 %v324_v52, 0.0  ;;  %v2590_v63 = vmax.f32 %v325_v53, 0.0  ;;  %v2377_v49 = vld [vmem:[%s3475_s3 + $0x28] sm:$0xff]  }
  0x10   :  { %2115 = vmatprep.subr.bf16.mxu0 %v2368_v15  ;;  %2123 = vmatprep.mubr.bf16.mxu0 %v536_v25  ;;  %v309_v0 = vmul.f32 %v2487_v11, %v31_v54  ;;  %v2599_v4 = vmax.f32 %v326_v56, 0.0  ;;  %v2601_v5 = vmax.f32 %v327_v57, 0.0  ;;  %v310_v6 = vmul.f32 %v2487_v11, %v32_v58  ;;  %v2378_v54 = vld [vmem:[%s3475_s3 + $0x30] sm:$0xff]  }
  0x11   :  { %v311_v7 = vmul.f32 %v2487_v11, %v33_v59  ;;  %v431_v9 = vrot.slane %v2502_v19, 1  ;;  %v432_v13 = vrot.slane %v2504_v20, 1  ;;  %v328_v14 = vadd.f32 %v2490_v12, %v308_v60  ;;  %2206 = vmatpush3.bf16.msra.mxu1 %v2389_v1 }
  0x12   :  { %v329_v16 = vadd.f32 %v2490_v12, %v309_v0  ;;  %v540_v22 = vpack.c.bf16 %v2601_v5, %v2599_v4  ;;  %v330_v23 = vadd.f32 %v2490_v12, %v310_v6  ;;  %v433_v25 = vrot.slane %v2546_v40, 1  ;;  %2207 = vmatprep.subr.bf16.mxu1 %v2390_v21  ;;  %v2379_v0 = vld [vmem:[%s3475_s3 + $0x38] sm:$0xff]  }
  0x13   :  { %2116 = vmatpush3.bf16.msra.mxu0 %v2368_v15  ;;  %v539_v15 = vpack.c.bf16 %v2590_v63, %v2588_v62  ;;  %v331_v24 = vadd.f32 %v2490_v12, %v311_v7  ;;  %v2634_v27 = vsel %vm3485_vm0, %v431_v9, %v432_v13  ;;  %v2636_v28 = vmax.f32 %v328_v14, 0.0  ;;  %v2405_v7 = vld [vmem:[%s3475_s3 + $0x148] sm:$0xff]  }
  0x14   :  { %2117 = vmatprep.subr.bf16.mxu0 %v2369_v18  ;;  %v312_v29 = vmul.f32 %v2487_v11, %v34_v17  ;;  %v2645_v31 = vmax.f32 %v329_v16, 0.0  ;;  %v2653_v34 = vmax.f32 %v330_v23, 0.0  ;;  %v74_v46 = vand.u32 15, %v2465_v3  ;;  %v2380_v16 = vld [vmem:[%s3475_s3 + $0x80] sm:$0xff]  }
  0x15   :  { %v2655_v35 = vmax.f32 %v331_v24, 0.0  ;;  %2208 = vmatpush3.bf16.msra.mxu1 %v2390_v21  ;;  %v56_v47 = vadd.s32 16, %v2465_v3  ;;  %v58_v52 = vadd.s32 32, %v2465_v3  ;;  %v352_v58 = vrot.slane %v2546_v40, 7 }
  0x16   :  { %v332_v37 = vadd.f32 %v2490_v12, %v312_v29  ;;  %v541_v38 = vpack.c.bf16 %v2645_v31, %v2636_v28  ;;  %vm2682_vm2 = vcmp.gt.s32.totalorder %v74_v46, 0  ;;  %v353_v60 = vrot.slane %v2548_v41, 7 }
  0x17   :  { %2118 = vmatpush3.bf16.msra.mxu0 %v2369_v18  ;;  %v313_v18 = vmul.f32 %v2487_v11, %v35_v8  ;;  %v2391_v11 = vld [vmem:[%s3475_s3 + $0x118] sm:$0xff]   ;;  %v542_v43 = vpack.c.bf16 %v2655_v35, %v2653_v34  ;;  %v88_v57 = vand.u32 15, %v56_v47  ;;  %vm2719_vm4 = vmpackc.low %vm2428_vm3, %vm2682_vm2  ;;  %v354_v8 = vrot.slane %v2552_v44, 7 }
  0x18   :  { %2119 = vmatprep.subr.bf16.mxu0 %v2370_v30  ;;  %2209 = vmatprep.subr.bf16.mxu1 %v2391_v11  ;;  %v102_v14 = vand.u32 15, %v58_v52  ;;  %v60_v21 = vadd.s32 48, %v2465_v3  ;;  %v356_v29 = vrot.slane %v2588_v62, 7  ;;  %v64_v52 = vadd.s32 80, %v2465_v3 }
  0x19   :  { %2210 = vmatpush3.bf16.msra.mxu1 %v2391_v11  ;;  %vm264_vm5 = vcmp.gt.s32.totalorder %v88_v57, 0  ;;  %v2381_v11 = vld [vmem:[%s3475_s3 + $0x88] sm:$0xff]   ;;  %v360_v57 = vrot.slane %v2636_v28, 7  ;;  %v63_v40 = vadd.s32 72, %v2465_v3 }
  0x1a   :  { %2211 = vmatprep.subr.bf16.mxu1 %v2392_v42  ;;  %vm266_vm6 = vcmp.gt.s32.totalorder %v102_v14, 0  ;;  %vm2743_vm7 = vmpackc.low %vm2428_vm3, %vm264_vm5 }
  0x1b   :  { %2120 = vmatpush3.bf16.msra.mxu0 %v2370_v30  ;;  %v2643_v30 = vsel %vm3485_vm0, %v432_v13, %v433_v25  ;;  %v355_v13 = vrot.slane %v2554_v45, 7  ;;  %vm2753_vm8 = vmpackc.low %vm2428_vm3, %vm266_vm6 }
  0x1c   :  { %2121 = vmatprep.subr.bf16.mxu0 %v2371_v32  ;;  %v1868_v33 = vpack.c.bf16 %v2643_v30, %v2634_v27  ;;  %v3510_v27 = vmov 0 }
  0x1d   :  { %2212 = vmatpush3.bf16.msra.mxu1 %v2392_v42  ;;  %v377_v17 = vsel %vm3481_vm1, %v354_v8, %v355_v13  ;;  %v359_v42 = vrot.slane %v2601_v5, 7  ;;  %v376_v47 = vsel %vm3481_vm1, %v355_v13, %v356_v29 }
  0x1f   :  { %2122 = vmatpush3.bf16.msra.mxu0 %v2371_v32  ;;  %v333_v32 = vadd.f32 %v2490_v12, %v313_v18  ;;  %v350_v12 = vrot.slane %v2502_v19, 7  ;;  %v378_v18 = vsel %vm3481_vm1, %v353_v60, %v354_v8  ;;  %v372_v14 = vsel %vm3481_vm1, %v359_v42, %v360_v57 }
  0x20   :  { %2139 = vmatprep.subr.bf16.mxu0 %v2372_v48 }
  0x21   :  { %v2663_v39 = vmax.f32 %v333_v32, 0.0  ;;  %v357_v32 = vrot.slane %v2590_v63, 7 }
  0x22   :  { %2124 = vmatmul.mubr.bf16.vlgmr.msra.gmra.mrb[0].mxu0 %v537_v50 }
  0x23   :  { %2140 = vmatpush3.bf16.msra.mxu0 %v2372_v48  ;;  %2127 = vmatprep.mubr.bf16.mxu0 %v538_v55  ;;  %v351_v48 = vrot.slane %v2504_v20, 7  ;;  %v365_v50 = vrot.slane %v2663_v39, 7  ;;  %v446_v59 = vrot.slane %v2663_v39, 1  ;;  %v375_v46 = vsel %vm3481_vm1, %v356_v29, %v357_v32  ;;  %v2385_v29 = vld [vmem:[%s3475_s3 + $0xa8] sm:$0xff]  }
  0x24   :  { %2141 = vmatprep.subr.bf16.mxu0 %v2373_v51  ;;  %v66_v20 = vadd.s32 96, %v2465_v3 }
  0x25   :  { %v381_v55 = vsel %vm3481_vm1, %v350_v12, %v351_v48  ;;  %v382_v56 = vsel %vm3481_vm1, %v365_v50, %v350_v12  ;;  %v2714_v6 = vsel %vm3485_vm0, %v446_v59, %v431_v9  ;;  %v379_v9 = vsel %vm3481_vm1, %v352_v58, %v353_v60  ;;  %v2382_v12 = vld [vmem:[%s3475_s3 + $0x90] sm:$0xff]  }
  0x26   :  { %v1820_v1 = vpack.c.bf16 %v381_v55, %v382_v56  ;;  %v158_v8 = vand.u32 15, %v66_v20  ;;  %v2410_v60 = vld [vmem:[%s3475_s3 + $0x170] sm:$0xff]  }
  0x27   :  { %2142 = vmatpush3.bf16.msra.mxu0 %v2373_v51  ;;  %v2679_v51 = vmax.f32 %v332_v37, 0.0  ;;  %v116_v37 = vand.u32 15, %v60_v21 }
  0x28   :  { %2143 = vmatprep.subr.bf16.mxu0 %v2374_v2  ;;  %vm274_vm14 = vcmp.gt.s32.totalorder %v158_v8, 0  ;;  %v441_v8 = vrot.slane %v2636_v28, 1  ;;  %v65_v28 = vadd.s32 88, %v2465_v3 }
  0x29   :  { %v445_v53 = vrot.slane %v2679_v51, 1  ;;  %v543_v61 = vpack.c.bf16 %v2663_v39, %v2679_v51  ;;  %vm268_vm9 = vcmp.gt.s32.totalorder %v116_v37, 0  ;;  %vm2820_vm2 = vmpackc.low %vm2428_vm3, %vm274_vm14  ;;  %v434_v39 = vrot.slane %v2548_v41, 1 }
  0x2a   :  { %2128 = vmatmul.mubr.bf16.gmra.mrb[4].mxu0 %v539_v15  ;;  %v380_v15 = vsel %vm3481_vm1, %v351_v48, %v352_v58  ;;  %vm2777_vm11 = vmpackc.low %vm2428_vm3, %vm268_vm9  ;;  %v361_v58 = vrot.slane %v2645_v31, 7  ;;  %v436_v41 = vrot.slane %v2554_v45, 1 }
  0x2b   :  { %2144 = vmatpush3.bf16.msra.mxu0 %v2374_v2  ;;  %2131 = vmatprep.mubr.bf16.mxu0 %v540_v22  ;;  %v2708_v2 = vsel %vm3485_vm0, %v445_v53, %v446_v59  ;;  %v62_v22 = vadd.s32 64, %v2465_v3  ;;  %v1823_v23 = vpack.c.bf16 %v379_v9, %v380_v15  ;;  %v2383_v59 = vld [vmem:[%s3475_s3 + $0x98] sm:$0xff]   ;;  %v2384_v9 = vld [vmem:[%s3475_s3 + $0xa0] sm:$0xff]  }
  0x2c   :  { %2145 = vmatprep.subr.bf16.mxu0 %v2375_v26  ;;  %v1889_v19 = vpack.c.bf16 %v2714_v6, %v2708_v2  ;;  %v371_v13 = vsel %vm3481_vm1, %v360_v57, %v361_v58  ;;  %v460_v57 = vsel %vm3485_vm0, %v433_v25, %v434_v39  ;;  %v2396_v2 = vld [vmem:[%s3475_s3 + $0xc0] sm:$0xff]   ;;  %v1039_v6 = vsub.s32 2, %v2465_v3 }
  0x2d   :  { %v1835_v21 = vpack.c.bf16 %v371_v13, %v372_v14  ;;  %v137_v13 = vand.u32 15, %v63_v40 }
  0x2f   :  { %2146 = vmatpush3.bf16.msra.mxu0 %v2375_v26  ;;  %v1826_v26 = vpack.c.bf16 %v377_v17, %v378_v18  ;;  %v68_v17 = vadd.s32 112, %v2465_v3  ;;  %v55_v18 = vadd.s32 8, %v2465_v3 }
  0x30   :  { %2147 = vmatprep.subr.bf16.mxu0 %v2376_v36 }
  0x31   :  { %v81_v37 = vand.u32 15, %v55_v18  ;;  %v442_v18 = vrot.slane %v2645_v31, 1 }
  0x32   :  { %2132 = vmatmul.mubr.bf16.gmra.mrb[8].mxu0 %v541_v38  ;;  %v358_v38 = vrot.slane %v2599_v4, 7 }
  0x33   :  { %2148 = vmatpush3.bf16.msra.mxu0 %v2376_v36  ;;  %2135 = vmatprep.mubr.bf16.mxu0 %v542_v43  ;;  %v130_v43 = vand.u32 15, %v62_v22  ;;  %vm279_vm6 = vcmp.lt.s32.totalorder %v81_v37, 15 }
  0x34   :  { %2149 = vmatprep.subr.bf16.mxu0 %v2377_v49  ;;  %v373_v48 = vsel %vm3481_vm1, %v358_v38, %v359_v42 }
  0x35   :  { %vm270_vm10 = vcmp.gt.s32.totalorder %v130_v43, 0  ;;  %v2386_v43 = vld [vmem:[%s3475_s3 + $0xb0] sm:$0xff]  }
  0x36   :  { %vm2787_vm12 = vmpackc.low %vm2428_vm3, %vm270_vm10 }
  0x37   :  { %2150 = vmatpush3.bf16.msra.mxu0 %v2377_v49  ;;  %v374_v49 = vsel %vm3481_vm1, %v357_v32, %v358_v38  ;;  %vm2850_vm10 = vmpackc.low %vm279_vm6, %vm2428_vm3 }
  0x38   :  { %2151 = vmatprep.subr.bf16.mxu0 %v2378_v54  ;;  %v1832_v56 = vpack.c.bf16 %v373_v48, %v374_v49  ;;  %v435_v48 = vrot.slane %v2552_v44, 1  ;;  %v2387_v49 = vld [vmem:[%s3475_s3 + $0xb8] sm:$0xff]   ;;  %v437_v44 = vrot.slane %v2588_v62, 1 }
  0x3a   :  { %2136 = vmatmul.mubr.bf16.gmra.mrb[12].mxu0 %v543_v61  ;;  %v144_v61 = vand.u32 15, %v64_v52  ;;  %v457_v45 = vsel %vm3485_vm0, %v436_v41, %v437_v44  ;;  %v458_v62 = vsel %vm3485_vm0, %v435_v48, %v436_v41  ;;  %v38_v52 = vld [vmem:[%s3478_s1 + $0x10] sm:$0xff] }
  0x3b   :  { %2152 = vmatpush3.bf16.msra.mxu0 %v2378_v54  ;;  %2155 = vmatprep.mubr.msk.bf16.mxu0 %vm2719_vm4, %v1820_v1  ;;  %v1829_v54 = vpack.c.bf16 %v375_v46, %v376_v47  ;;  %v363_v1 = vrot.slane %v2655_v35, 7  ;;  %v57_v46 = vadd.s32 24, %v2465_v3  ;;  %v59_v47 = vadd.s32 40, %v2465_v3 }
  0x3c   :  { %2153 = vmatprep.subr.bf16.mxu0 %v2379_v0  ;;  %vm272_vm13 = vcmp.gt.s32.totalorder %v144_v61, 0  ;;  %v1874_v30 = vpack.c.bf16 %v457_v45, %v458_v62  ;;  %v3512_v61 = vmov 0 }
  0x3d   :  { %vm2811_vm15 = vmpackc.low %vm2428_vm3, %vm272_vm13  ;;  %v95_v20 = vand.u32 15, %v57_v46 }
  0x3f   :  { %2154 = vmatpush3.bf16.msra.mxu0 %v2379_v0  ;;  %v362_v0 = vrot.slane %v2653_v34, 7  ;;  %vm281_vm13 = vcmp.lt.s32.totalorder %v95_v20, 15 }
  0x40   :  { %2171 = vmatprep.subr.bf16.mxu0 %v2380_v16 }
  0x41   :  { %v369_v15 = vsel %vm3481_vm1, %v362_v0, %v363_v1 }
  0x42   :  { %2156 = vmatmul.mubr.msk.bf16.vlgmr.msra.gmra.mrb[0].mxu0 %vm2743_vm7, %v1823_v23 }
  0x43   :  { %2172 = vmatpush3.bf16.msra.mxu0 %v2380_v16  ;;  %2159 = vmatprep.mubr.msk.bf16.mxu0 %vm2753_vm8, %v1826_v26  ;;  %v370_v16 = vsel %vm3481_vm1, %v361_v58, %v362_v0  ;;  %v364_v26 = vrot.slane %v2679_v51, 7  ;;  %v61_v58 = vadd.s32 56, %v2465_v3 }
  0x44   :  { %2173 = vmatprep.subr.bf16.mxu0 %v2381_v11  ;;  %v1838_v23 = vpack.c.bf16 %v369_v15, %v370_v16  ;;  %v3514_v16 = vmov 0 }
  0x45   :  { %v367_v38 = vsel %vm3481_vm1, %v364_v26, %v365_v50  ;;  %v368_v42 = vsel %vm3481_vm1, %v363_v1, %v364_v26  ;;  %v123_v0 = vand.u32 15, %v61_v58  ;;  %v440_v1 = vrot.slane %v2601_v5, 1 }
  0x46   :  { %v151_v26 = vand.u32 15, %v65_v28 }
  0x47   :  { %2174 = vmatpush3.bf16.msra.mxu0 %v2381_v11  ;;  %v172_v11 = vand.u32 15, %v68_v17  ;;  %v453_v14 = vsel %vm3485_vm0, %v440_v1, %v441_v8 }
  0x48   :  { %2175 = vmatprep.subr.bf16.mxu0 %v2382_v12 }
  0x49   :  { %vm276_vm5 = vcmp.gt.s32.totalorder %v172_v11, 0 }
  0x4a   :  { %2160 = vmatmul.mubr.msk.bf16.gmra.mrb[4].mxu0 %vm2777_vm11, %v1829_v54  ;;  %vm2842_vm9 = vmpackc.low %vm2428_vm3, %vm276_vm5  ;;  %v109_v54 = vand.u32 15, %v59_v47  ;;  %v2413_v47 = vld [vmem:[%s3476_s0] sm:$0xff] }
  0x4b   :  { %2176 = vmatpush3.bf16.msra.mxu0 %v2382_v12  ;;  %2163 = vmatprep.mubr.msk.bf16.mxu0 %vm2787_vm12, %v1832_v56  ;;  %v1841_v12 = vpack.c.bf16 %v367_v38, %v368_v42  ;;  %v459_v56 = vsel %vm3485_vm0, %v434_v39, %v435_v48  ;;  %vm2876_vm5 = vmpackc.low %vm281_vm13, %vm2428_vm3  ;;  %vm285_vm13 = vcmp.lt.s32.totalorder %v123_v0, 15  ;;  %v69_v38 = vadd.s32 120, %v2465_v3  ;;  %v2394_v39 = vld [vmem:[%s3475_s3 + $0x130] sm:$0xff]   ;;  %v2395_v48 = vld [vmem:[%s3475_s3 + $0x138] sm:$0xff]  }
  0x4c   :  { %2177 = vmatprep.subr.bf16.mxu0 %v2383_v59  ;;  %vm283_vm14 = vcmp.lt.s32.totalorder %v109_v54, 15  ;;  %v1871_v25 = vpack.c.bf16 %v459_v56, %v460_v57  ;;  %v3511_v27 = vsel %vm2876_vm5, 4294967295, %v3510_v27  ;;  %vm2904_vm1 = vmpackc.low %vm285_vm13, %vm2428_vm3  ;;  %vm289_vm13 = vcmp.lt.s32.totalorder %v151_v26, 15 }
  0x4d   :  { %vm2883_vm6 = vmpackc.low %vm283_vm14, %vm2428_vm3  ;;  %vm287_vm14 = vcmp.lt.s32.totalorder %v137_v13, 15  ;;  %v3515_v16 = vsel %vm2904_vm1, 4294967295, %v3514_v16  ;;  %v179_v51 = vand.u32 15, %v69_v38 }
  0x4e   :  { %v3513_v61 = vsel %vm2883_vm6, 4294967295, %v3512_v61 }
  0x4f   :  { %2178 = vmatpush3.bf16.msra.mxu0 %v2383_v59  ;;  %v439_v59 = vrot.slane %v2599_v4, 1 }
  0x50   :  { %2179 = vmatprep.subr.bf16.mxu0 %v2384_v9 }
  0x51   :  { %v454_v5 = vsel %vm3485_vm0, %v439_v59, %v440_v1 }
  0x52   :  { %2164 = vmatmul.mubr.msk.bf16.gmra.mrb[8].mxu0 %vm2811_vm15, %v1835_v21  ;;  %v1880_v17 = vpack.c.bf16 %v453_v14, %v454_v5  ;;  %v443_v21 = vrot.slane %v2653_v34, 1  ;;  %v452_v34 = vsel %vm3485_vm0, %v441_v8, %v442_v18 }
  0x53   :  { %2180 = vmatpush3.bf16.msra.mxu0 %v2384_v9  ;;  %2167 = vmatprep.mubr.msk.bf16.mxu0 %vm2820_vm2, %v1838_v23  ;;  %v67_v9 = vadd.s32 104, %v2465_v3  ;;  %v3516_v23 = vmov 0 }
  0x54   :  { %2181 = vmatprep.subr.bf16.mxu0 %v2385_v29  ;;  %v451_v31 = vsel %vm3485_vm0, %v442_v18, %v443_v21 }
  0x55   :  { %v165_v11 = vand.u32 15, %v67_v9  ;;  %v1883_v42 = vpack.c.bf16 %v451_v31, %v452_v34 }
  0x57   :  { %2182 = vmatpush3.bf16.msra.mxu0 %v2385_v29  ;;  %v444_v29 = vrot.slane %v2655_v35, 1 }
  0x58   :  { %2183 = vmatprep.subr.bf16.mxu0 %v2386_v43 }
  0x59   :  { %v449_v37 = vsel %vm3485_vm0, %v444_v29, %v445_v53  ;;  %v450_v35 = vsel %vm3485_vm0, %v443_v21, %v444_v29  ;;  %v3522_v53 = vmov 0 }
  0x5a   :  { %2168 = vmatmul.mubr.msk.bf16.gmra.mrb[12].mxu0 %vm2842_vm9, %v1841_v12  ;;  %v1886_v46 = vpack.c.bf16 %v449_v37, %v450_v35  ;;  %v2393_v12 = vld [vmem:[%s3475_s3 + $0x128] sm:$0xff]  }
  0x5b   :  { %2184 = vmatpush3.bf16.msra.mxu0 %v2386_v43  ;;  %2187 = vmatprep.mubr.msk.bf16.mxu0 %vm2850_vm10, %v1868_v33  ;;  %v438_v33 = vrot.slane %v2590_v63, 1 }
  0x5c   :  { %2185 = vmatprep.subr.bf16.mxu0 %v2387_v49  ;;  %2213 = vmatprep.subr.bf16.mxu1 %v2393_v12 }
  0x5d   :  { %v455_v63 = vsel %vm3485_vm0, %v438_v33, %v439_v59  ;;  %v456_v4 = vsel %vm3485_vm0, %v437_v44, %v438_v33  ;;  %vm293_vm0 = vcmp.lt.s32.totalorder %v179_v51, 15  ;;  %2214 = vmatpush3.bf16.msra.mxu1 %v2393_v12 }
  0x5e   :  { %v1877_v15 = vpack.c.bf16 %v455_v63, %v456_v4  ;;  %2215 = vmatprep.subr.bf16.mxu1 %v2394_v39 }
  0x5f   :  { %2186 = vmatpush3.bf16.msra.mxu0 %v2387_v49  ;;  %v2970_v49 = vrot.slane %v2484_v10, %v1039_v6 }
  0x61   :  { %2216 = vmatpush3.bf16.msra.mxu1 %v2394_v39 }
  0x62   :  { %2188 = vmatmul.mubr.msk.bf16.vlgmr.msra.gmra.mrb[0].mxu0 %vm2876_vm5, %v1871_v25  ;;  %vm2946_vm5 = vmpackc.low %vm293_vm0, %vm2428_vm3  ;;  %2217 = vmatprep.subr.bf16.mxu1 %v2395_v48  ;;  %vm3524_vm0 = vcmp.lt.s32.totalorder %v2465_v3, 1 }
  0x63   :  { %2191 = vmatprep.mubr.msk.bf16.mxu0 %vm2883_vm6, %v1874_v30  ;;  %vm2911_vm6 = vmpackc.low %vm287_vm14, %vm2428_vm3  ;;  %vm291_vm14 = vcmp.lt.s32.totalorder %v165_v11, 15  ;;  %v3523_v53 = vsel %vm2946_vm5, 4294967295, %v3522_v53 }
  0x64   :  { %v3517_v23 = vsel %vm2911_vm6, 4294967295, %v3516_v23 }
  0x65   :  { %2218 = vmatpush3.bf16.msra.mxu1 %v2395_v48 }
  0x66   :  { %2235 = vmatprep.subr.bf16.mxu1 %v2396_v2 }
  0x6a   :  { %2192 = vmatmul.mubr.msk.bf16.gmra.mrb[4].mxu0 %vm2904_vm1, %v1877_v15  ;;  %vm2937_vm1 = vmpackc.low %vm291_vm14, %vm2428_vm3 }
  0x6b   :  { %2195 = vmatprep.mubr.msk.bf16.mxu0 %vm2911_vm6, %v1880_v17  ;;  %vm2932_vm6 = vmpackc.low %vm289_vm13, %vm2428_vm3  ;;  %vm3525_vm3 = vcmp.lt.s32.totalorder %v2465_v3, 7 }
  0x6c   :  { %vm3526_vm13 = vmmov %vm3524_vm0 }
  0x6d   :  { %vm3527_vm14 = vmmov %vm3524_vm0 }
  0x72   :  { %2196 = vmatmul.mubr.msk.bf16.gmra.mrb[8].mxu0 %vm2932_vm6, %v1883_v42  ;;  %v2397_v42 = vld [vmem:[%s3475_s3 + $0xc8] sm:$0xff]  }
  0x73   :  { %2199 = vmatprep.mubr.msk.bf16.mxu0 %vm2937_vm1, %v1886_v46 }
  0x7a   :  { %2200 = vmatmul.mubr.msk.bf16.gmra.mrb[12].mxu0 %vm2946_vm5, %v1889_v19  ;;  %v1059_v19 = vsub.s32 3, %v2465_v3 }
  0x7c   :  { %v2973_v20 = vrot.slane %v2484_v10, %v1059_v19 }
 0x135   :  { %v2189_v41 = vpop.f32.mrb[0].mxu0 }
 0x136   :  { %v1043_v44 = vmul.f32 %v2189_v41, %v2970_v49  ;;  %v958_v54 = vpop.f32.mrb[1].mxu0 }
 0x137   :  { %v1041_v56 = vmul.f32 %v2970_v49, %v958_v54  ;;  %v2190_v57 = vpop.f32.mrb[2].mxu0 }
 0x138   :  { %v1063_v45 = vadd.f32 %v2973_v20, %v1043_v44  ;;  %v1044_v62 = vmul.f32 %v2190_v57, %v2970_v49  ;;  %v961_v58 = vpop.f32.mrb[3].mxu0 }
 0x139   :  { %v1061_v40 = vadd.f32 %v2973_v20, %v1041_v56  ;;  %v1042_v25 = vmul.f32 %v2970_v49, %v961_v58 }
 0x13a   :  { %v1079_v30 = vmax.f32 %v1063_v45, 0.0  ;;  %v1064_v10 = vadd.f32 %v2973_v20, %v1044_v62  ;;  %v2398_v45 = vld [vmem:[%s3475_s3 + $0xd0] sm:$0xff]  }
 0x13b   :  { %v2982_v33 = vmax.f32 %v1061_v40, 0.0  ;;  %v1062_v59 = vadd.f32 %v2973_v20, %v1042_v25 }
 0x13c   :  { %v1095_v0 = vrot.slane %v1079_v30, 7  ;;  %v2985_v1 = vmax.f32 %v1064_v10, 0.0  ;;  %v1143_v8 = vrot.slane %v1079_v30, 1 }
 0x13d   :  { %v1093_v13 = vrot.slane %v2982_v33, 7  ;;  %v3487_v63 = vrot.slane %v2982_v33, 1  ;;  %v1078_v4 = vmax.f32 %v1062_v59, 0.0  ;;  %v2193_v14 = vpop.f32.mrb[4].mxu0 }
 0x13e   :  { %v1096_v5 = vrot.slane %v2985_v1, 7  ;;  %v1144_v28 = vrot.slane %v2985_v1, 1  ;;  %v1047_v9 = vmul.f32 %v2193_v14, %v2970_v49  ;;  %v974_v15 = vpop.f32.mrb[5].mxu0  ;;  %v1215_v17 = vpack.c.bf16 %v2985_v1, %v1079_v30 }
 0x13f   :  { %v1094_v18 = vrot.slane %v1078_v4, 7  ;;  %v1142_v21 = vrot.slane %v1078_v4, 1  ;;  %v1045_v26 = vmul.f32 %v2970_v49, %v974_v15  ;;  %v2194_v29 = vpop.f32.mrb[6].mxu0  ;;  %v1214_v11 = vpack.c.bf16 %v1078_v4, %v2982_v33 }
 0x140   :  { %v2997_v31 = vsel %vm3524_vm0, %v1095_v0, %v1096_v5  ;;  %v3001_v34 = vsel %vm3525_vm3, %v1143_v8, %v1144_v28  ;;  %v1067_v37 = vadd.f32 %v2973_v20, %v1047_v9  ;;  %v1048_v35 = vmul.f32 %v2194_v29, %v2970_v49  ;;  %v977_v38 = vpop.f32.mrb[7].mxu0  ;;  %vm3528_vm0 = vmmov %vm3525_vm3 }
 0x141   :  { %v3010_v46 = vsel %vm3526_vm13, %v1094_v18, %v1095_v0  ;;  %v1065_v51 = vadd.f32 %v2973_v20, %v1045_v26  ;;  %v1046_v12 = vmul.f32 %v2970_v49, %v977_v38  ;;  %2219 = vmatprep.mubr.bf16.mxu1 %v1214_v11  ;;  %v3018_v39 = vsel %vm3527_vm14, %v1093_v13, %v1094_v18  ;;  %vm3529_vm3 = vmmov %vm3528_vm0 }
 0x142   :  { %v3022_v6 = vmax.f32 %v1067_v37, 0.0  ;;  %v1068_v19 = vadd.f32 %v2973_v20, %v1048_v35  ;;  %2220 = vmatmul.mubr.bf16.vlgmr.msra.gmra.mrb[0].mxu1 %v1215_v17  ;;  %v3027_v41 = vsel %vm3528_vm0, %v1142_v21, %v1143_v8  ;;  %v3034_v56 = vsel %vm3529_vm3, %v3487_v63, %v1142_v21  ;;  %vm3530_vm13 = vmmov %vm3528_vm0  ;;  %v2399_v35 = vld [vmem:[%s3475_s3 + $0xd8] sm:$0xff]  }
 0x143   :  { %v1081_v44 = vmax.f32 %v1065_v51, 0.0  ;;  %v1066_v54 = vadd.f32 %v2973_v20, %v1046_v12  ;;  %2236 = vmatpush3.bf16.msra.mxu1 %v2396_v2  ;;  %vm3531_vm0 = vmmov %vm3527_vm14  ;;  %v3557_v22 = vpack.c.bf16 %v3027_v41, %v3034_v56 }
 0x144   :  { %v3036_v57 = vmax.f32 %v1068_v19, 0.0  ;;  %2237 = vmatprep.subr.bf16.mxu1 %v2397_v42  ;;  %v1099_v58 = vrot.slane %v3022_v6, 7  ;;  %v1147_v10 = vrot.slane %v3022_v6, 1  ;;  %vm3532_vm3 = vmmov %vm3531_vm0 }
 0x145   :  { %v1097_v40 = vrot.slane %v1081_v44, 7  ;;  %v1145_v2 = vrot.slane %v1081_v44, 1  ;;  %v1082_v25 = vmax.f32 %v1066_v54, 0.0  ;;  %v2197_v30 = vpop.f32.mrb[8].mxu0 }
 0x146   :  { %v1100_v59 = vrot.slane %v3036_v57, 7  ;;  %v1051_v0 = vmul.f32 %v2197_v30, %v2970_v49  ;;  %v990_v1 = vpop.f32.mrb[9].mxu0  ;;  %v1217_v8 = vpack.c.bf16 %v3036_v57, %v3022_v6  ;;  %v1148_v30 = vrot.slane %v3036_v57, 1 }
 0x147   :  { %v3051_v4 = vsel %vm3530_vm13, %v1144_v28, %v1145_v2  ;;  %v1098_v14 = vrot.slane %v1082_v25, 7  ;;  %v1146_v9 = vrot.slane %v1082_v25, 1  ;;  %v1049_v15 = vmul.f32 %v2970_v49, %v990_v1  ;;  %v2198_v17 = vpop.f32.mrb[10].mxu0  ;;  %2238 = vmatpush3.bf16.msra.mxu1 %v2397_v42  ;;  %vm3533_vm13 = vmmov %vm3531_vm0 }
 0x148   :  { %v1071_v21 = vadd.f32 %v2973_v20, %v1051_v0  ;;  %v1052_v26 = vmul.f32 %v2198_v17, %v2970_v49  ;;  %v993_v29 = vpop.f32.mrb[11].mxu0  ;;  %v1216_v11 = vpack.c.bf16 %v1082_v25, %v1081_v44  ;;  %2239 = vmatprep.subr.bf16.mxu1 %v2398_v45  ;;  %v3069_v42 = vsel %vm3531_vm0, %v1096_v5, %v1097_v40  ;;  %v2400_v17 = vld [vmem:[%s3475_s3 + $0xe0] sm:$0xff]  }
 0x149   :  { %v1069_v37 = vadd.f32 %v2973_v20, %v1049_v15  ;;  %v1050_v28 = vmul.f32 %v2970_v49, %v993_v29  ;;  %v3065_v38 = vsel %vm3527_vm14, %v1097_v40, %v1098_v14  ;;  %v3078_v44 = vsel %vm3532_vm3, %v1099_v58, %v1100_v59 }
 0x14a   :  { %v3071_v51 = vmax.f32 %v1071_v21, 0.0  ;;  %v1072_v12 = vadd.f32 %v2973_v20, %v1052_v26  ;;  %2223 = vmatprep.mubr.bf16.mxu1 %v1216_v11  ;;  %v3085_v5 = vsel %vm3533_vm13, %v1098_v14, %v1099_v58  ;;  %vm3534_vm14 = vcmp.lt.s32.totalorder %v2465_v3, 7  ;;  %vm3536_vm13 = vmmov %vm3532_vm3 }
 0x14b   :  { %v3080_v54 = vmax.f32 %v1069_v37, 0.0  ;;  %v1070_v25 = vadd.f32 %v2973_v20, %v1050_v28  ;;  %2224 = vmatmul.mubr.bf16.gmra.mrb[4].mxu1 %v1217_v8  ;;  %v3091_v40 = vsel %vm3534_vm14, %v1146_v9, %v1147_v10  ;;  %vm3535_vm0 = vmmov %vm3534_vm14  ;;  %v3554_v24 = vpack.c.bf16 %v3078_v44, %v3085_v5 }
 0x14c   :  { %v3094_v0 = vmax.f32 %v1072_v12, 0.0  ;;  %2240 = vmatpush3.bf16.msra.mxu1 %v2398_v45  ;;  %v1103_v8 = vrot.slane %v3071_v51, 7  ;;  %v3105_v57 = vsel %vm3535_vm0, %v1145_v2, %v1146_v9  ;;  %v3489_v45 = vrot.slane %v3071_v51, 1  ;;  %vm3537_vm14 = vmmov %vm3532_vm3 }
 0x14d   :  { %v1101_v15 = vrot.slane %v3080_v54, 7  ;;  %v1086_v58 = vmax.f32 %v1070_v25, 0.0  ;;  %v2201_v14 = vpop.f32.mrb[12].mxu0  ;;  %2241 = vmatprep.subr.bf16.mxu1 %v2399_v35  ;;  %v1149_v37 = vrot.slane %v3080_v54, 1  ;;  %vm3538_vm0 = vmmov %vm3532_vm3  ;;  %v3558_v32 = vpack.c.bf16 %v3051_v4, %v3001_v34  ;;  %v39_v34 = vld [vmem:[%s3478_s1 + $0x18] sm:$0xff] }
 0x14e   :  { %v1104_v21 = vrot.slane %v3094_v0, 7  ;;  %v1055_v26 = vmul.f32 %v2201_v14, %v2970_v49  ;;  %v1006_v29 = vpop.f32.mrb[13].mxu0  ;;  %v1219_v11 = vpack.c.bf16 %v3094_v0, %v3071_v51  ;;  %v1152_v19 = vrot.slane %v3094_v0, 1  ;;  %v2414_v4 = vld [vmem:[%s3476_s0 + $0x18] sm:$0xff] }
 0x14f   :  { %v1102_v28 = vrot.slane %v1086_v58, 7  ;;  %v1053_v12 = vmul.f32 %v2970_v49, %v1006_v29  ;;  %v2202_v25 = vpop.f32.mrb[14].mxu0  ;;  %v1218_v18 = vpack.c.bf16 %v1086_v58, %v3080_v54  ;;  %v3119_v14 = vsel %vm3532_vm3, %v1100_v59, %v1101_v15 }
 0x150   :  { %v1075_v2 = vadd.f32 %v2973_v20, %v1055_v26  ;;  %v1056_v9 = vmul.f32 %v2202_v25, %v2970_v49  ;;  %2242 = vmatpush3.bf16.msra.mxu1 %v2399_v35  ;;  %v1009_v62 = vpop.f32.mrb[15].mxu0  ;;  %v3123_v1 = vsel %vm3536_vm13, %v1103_v8, %v1104_v21  ;;  %v2401_v35 = vld [vmem:[%s3475_s3 + $0xe8] sm:$0xff]   ;;  %vm3539_vm3 = vcmp.lt.s32.totalorder %v2465_v3, 7 }
 0x151   :  { %v1073_v29 = vadd.f32 %v2973_v20, %v1053_v12  ;;  %v1054_v54 = vmul.f32 %v2970_v49, %v1009_v62  ;;  %2227 = vmatprep.mubr.bf16.mxu1 %v1218_v18  ;;  %2243 = vmatprep.subr.bf16.mxu1 %v2400_v17  ;;  %v3133_v59 = vsel %vm3537_vm14, %v1101_v15, %v1102_v28  ;;  %vm3540_vm13 = vmmov %vm3539_vm3 }
 0x152   :  { %v1091_v26 = vmax.f32 %v1075_v2, 0.0  ;;  %v1076_v25 = vadd.f32 %v2973_v20, %v1056_v9  ;;  %v3140_v12 = vsel %vm3538_vm0, %v1102_v28, %v1103_v8  ;;  %v1150_v2 = vrot.slane %v1086_v58, 1  ;;  %vm3541_vm14 = vmmov %vm3538_vm0 }
 0x153   :  { %v1089_v49 = vmax.f32 %v1073_v29, 0.0  ;;  %v1074_v62 = vadd.f32 %v2973_v20, %v1054_v54  ;;  %2228 = vmatmul.mubr.bf16.gmra.mrb[8].mxu1 %v1219_v11  ;;  %v3149_v0 = vsel %vm3539_vm3, %v1148_v30, %v1149_v37  ;;  %v2402_v20 = vld [vmem:[%s3475_s3 + $0xf0] sm:$0xff]   ;;  %v3158_v58 = vsel %vm3540_vm13, %v1147_v10, %v1148_v30  ;;  %vm3542_vm3 = vmmov %vm3538_vm0 }
 0x154   :  { %v1107_v48 = vrot.slane %v1091_v26, 7  ;;  %v1092_v9 = vmax.f32 %v1076_v25, 0.0  ;;  %2244 = vmatpush3.bf16.msra.mxu1 %v2400_v17  ;;  %v1162_v30 = vsel %vm3540_vm13, %v1150_v2, %v3489_v45  ;;  %vm3543_vm5 = vmmov %vm3540_vm13  ;;  %v3553_v3 = vpack.c.bf16 %v3065_v38, %v3069_v42  ;;  %v2409_v38 = vld [vmem:[%s3475_s3 + $0x168] sm:$0xff]   ;;  %v2411_v42 = vld [vmem:[%s3475_s3 + $0x178] sm:$0xff]  }
 0x155   :  { %v1105_v8 = vrot.slane %v1089_v49, 7  ;;  %v1153_v28 = vrot.slane %v1089_v49, 1  ;;  %v1090_v29 = vmax.f32 %v1074_v62, 0.0  ;;  %2245 = vmatprep.subr.bf16.mxu1 %v2401_v35  ;;  %v3555_v36 = vpack.c.bf16 %v3133_v59, %v3119_v14 }
 0x156   :  { %v1108_v11 = vrot.slane %v1092_v9, 7  ;;  %v1156_v17 = vrot.slane %v1092_v9, 1  ;;  %v1221_v54 = vpack.c.bf16 %v1092_v9, %v1091_v26  ;;  %v1155_v9 = vrot.slane %v1091_v26, 1 }
 0x157   :  { %v1106_v15 = vrot.slane %v1090_v29, 7  ;;  %v1154_v18 = vrot.slane %v1090_v29, 1  ;;  %v1220_v62 = vpack.c.bf16 %v1090_v29, %v1089_v49  ;;  %v1112_v63 = vsel %vm3541_vm14, %v1104_v21, %v1105_v8  ;;  %vm3544_vm14 = vmmov %vm3538_vm0 }
 0x158   :  { %2246 = vmatpush3.bf16.msra.mxu1 %v2401_v35  ;;  %v1124_v6 = vsel %vm3538_vm0, %v1108_v11, %v1093_v13  ;;  %v1109_v10 = vsel %vm3542_vm3, %v1107_v48, %v1108_v11  ;;  %v1163_v49 = vsel %vm3543_vm5, %v1149_v37, %v1150_v2  ;;  %v2403_v13 = vld [vmem:[%s3475_s3 + $0xf8] sm:$0xff]   ;;  %v1160_v37 = vsel %vm3543_vm5, %v1152_v19, %v1153_v28  ;;  %vm3546_vm3 = vmmov %vm3543_vm5 }
 0x159   :  { %2231 = vmatprep.mubr.bf16.mxu1 %v1220_v62  ;;  %2247 = vmatprep.subr.bf16.mxu1 %v2402_v20  ;;  %v1940_v21 = vpack.c.bf16 %v3018_v39, %v1124_v6  ;;  %v1111_v35 = vsel %vm3544_vm14, %v1105_v8, %v1106_v15  ;;  %v1110_v29 = vsel %vm3538_vm0, %v1106_v15, %v1107_v48  ;;  %v3545_v26 = vrot.slane %v3071_v51, 1  ;;  %vm3547_vm13 = vmmov %vm3546_vm3  ;;  %v2417_v6 = vld [vmem:[%s3476_s0 + $0x20] sm:$0xff] }
 0x15a   :  { %v1958_v11 = vpack.c.bf16 %v1111_v35, %v1112_v63  ;;  %v1961_v25 = vpack.c.bf16 %v1109_v10, %v1110_v29  ;;  %v2000_v45 = vpack.c.bf16 %v1162_v30, %v1163_v49  ;;  %v1158_v2 = vsel %vm3547_vm13, %v1154_v18, %v1155_v9  ;;  %vm3548_vm14 = vmmov %vm3546_vm3  ;;  %v43_v30 = vld [vmem:[%s3478_s1 + $0x38] sm:$0xff]  ;;  %v41_v35 = vld [vmem:[%s3478_s1 + $0x28] sm:$0xff] }
 0x15b   :  { %2232 = vmatmul.mubr.bf16.gmra.mrb[12].mxu1 %v1221_v54  ;;  %v1161_v39 = vsel %vm3546_vm3, %v3545_v26, %v1152_v19  ;;  %v1159_v8 = vsel %vm3548_vm14, %v1153_v28, %v1154_v18  ;;  %vm3549_vm0 = vmmov %vm3546_vm3  ;;  %v3550_v51 = vrot.slane %v2982_v33, 1  ;;  %v2404_v54 = vld [vmem:[%s3475_s3 + $0x140] sm:$0xff]   ;;  %v3552_v28 = vpack.c.bf16 %v2997_v31, %v3010_v46  ;;  %v2406_v33 = vld [vmem:[%s3475_s3 + $0x150] sm:$0xff]  }
 0x15c   :  { %v1157_v63 = vsel %vm3549_vm0, %v1155_v9, %v1156_v17  ;;  %2248 = vmatpush3.bf16.msra.mxu1 %v2402_v20  ;;  %2251 = vmatprep.mubr.msk.bf16.mxu1 %vm2719_vm4, %v1940_v21  ;;  %v2003_v48 = vpack.c.bf16 %v1160_v37, %v1161_v39  ;;  %v2006_v15 = vpack.c.bf16 %v1158_v2, %v1159_v8  ;;  %vm3551_vm5 = vmmov %vm3549_vm0  ;;  %v2407_v31 = vld [vmem:[%s3475_s3 + $0x158] sm:$0xff]   ;;  %v2408_v46 = vld [vmem:[%s3475_s3 + $0x160] sm:$0xff]  }
 0x15d   :  { %v1172_v19 = vsel %vm3551_vm5, %v1156_v17, %v3550_v51  ;;  %2249 = vmatprep.subr.bf16.mxu1 %v2403_v13  ;;  %v3556_v55 = vpack.c.bf16 %v3123_v1, %v3140_v12  ;;  %vm3559_vm4 = vnez %v3511_v27  ;;  %v3560_v44 = vpack.c.bf16 %v3091_v40, %v3105_v57  ;;  %v37_v40 = vld [vmem:[%s3478_s1 + $0x8] sm:$0xff]  ;;  %v42_v12 = vld [vmem:[%s3478_s1 + $0x30] sm:$0xff]  ;;  %v2418_v21 = vld [vmem:[%s3476_s0 + $0x38] sm:$0xff] }
 0x15e   :  { %v2009_v18 = vpack.c.bf16 %v1172_v19, %v1157_v63  ;;  %v3562_v50 = vpack.c.bf16 %v3149_v0, %v3158_v58  ;;  %v2416_v58 = vld [vmem:[%s3476_s0 + $0x30] sm:$0xff]  ;;  %v2419_v37 = vld [vmem:[%s3476_s0 + $0x28] sm:$0xff]  ;;  %v44_v51 = vld [vmem:[%s3478_s1 + $0x40] sm:$0xff] }
 0x15f   :  { %v46_v8 = vld [vmem:[%s3478_s1 + $0x50] sm:$0xff] }
 0x160   :  { %2250 = vmatpush3.bf16.msra.mxu1 %v2403_v13 }
 0x161   :  { %2267 = vmatprep.subr.bf16.mxu1 %v2404_v54 }
 0x163   :  { %2252 = vmatmul.mubr.msk.bf16.vlgmr.msra.gmra.mrb[0].mxu1 %vm2743_vm7, %v3552_v28  ;;  %vm3561_vm7 = vnez %v3513_v61  ;;  %v2412_v61 = vld [vmem:[%s3476_s0 + $0x10] sm:$0xff] }
 0x164   :  { %2255 = vmatprep.mubr.msk.bf16.mxu1 %vm2753_vm8, %v3553_v3  ;;  %2268 = vmatpush3.bf16.msra.mxu1 %v2404_v54  ;;  %vm3563_vm8 = vnez %v3515_v16  ;;  %v2421_v54 = vld [vmem:[%s3476_s0 + $0x40] sm:$0xff] }
 0x165   :  { %2269 = vmatprep.subr.bf16.mxu1 %v2405_v7 }
 0x168   :  { %2270 = vmatpush3.bf16.msra.mxu1 %v2405_v7  ;;  %v47_v7 = vld [vmem:[%s3478_s1 + $0x58] sm:$0xff] }
 0x169   :  { %2271 = vmatprep.subr.bf16.mxu1 %v2406_v33 }
 0x16b   :  { %2256 = vmatmul.mubr.msk.bf16.gmra.mrb[4].mxu1 %vm2777_vm11, %v3554_v24  ;;  %vm3564_vm11 = vnez %v3517_v23  ;;  %v36_v23 = vld [vmem:[%s3478_s1] sm:$0xff]  ;;  %v45_v24 = vld [vmem:[%s3478_s1 + $0x48] sm:$0xff] }
 0x16c   :  { %2259 = vmatprep.mubr.msk.bf16.mxu1 %vm2787_vm12, %v3555_v36  ;;  %2272 = vmatpush3.bf16.msra.mxu1 %v2406_v33  ;;  %vm3565_vm12 = vnez %v3523_v53  ;;  %v2422_v33 = vld [vmem:[%s3476_s0 + $0x58] sm:$0xff] }
 0x16d   :  { %2273 = vmatprep.subr.bf16.mxu1 %v2407_v31 }
 0x170   :  { %2274 = vmatpush3.bf16.msra.mxu1 %v2407_v31 }
 0x171   :  { %2275 = vmatprep.subr.bf16.mxu1 %v2408_v46 }
 0x173   :  { %2260 = vmatmul.mubr.msk.bf16.gmra.mrb[8].mxu1 %vm2811_vm15, %v3556_v55 }
 0x174   :  { %2263 = vmatprep.mubr.msk.bf16.mxu1 %vm2820_vm2, %v1958_v11  ;;  %2276 = vmatpush3.bf16.msra.mxu1 %v2408_v46 }
 0x175   :  { %2277 = vmatprep.subr.bf16.mxu1 %v2409_v38 }
 0x178   :  { %2278 = vmatpush3.bf16.msra.mxu1 %v2409_v38  ;;  %v2423_v38 = vld [vmem:[%s3476_s0 + $0x48] sm:$0xff] }
 0x179   :  { %2279 = vmatprep.subr.bf16.mxu1 %v2410_v60 }
 0x17b   :  { %2264 = vmatmul.mubr.msk.bf16.gmra.mrb[12].mxu1 %vm2842_vm9, %v1961_v25  ;;  %v40_v25 = vld [vmem:[%s3478_s1 + $0x20] sm:$0xff] }
 0x17c   :  { %2280 = vmatpush3.bf16.msra.mxu1 %v2410_v60  ;;  %2283 = vmatprep.mubr.msk.bf16.mxu1 %vm2850_vm10, %v3557_v22  ;;  %v50_v22 = vld [vmem:[%s3478_s1 + $0x70] sm:$0xff] }
 0x17d   :  { %2281 = vmatprep.subr.bf16.mxu1 %v2411_v42 }
 0x180   :  { %2282 = vmatpush3.bf16.msra.mxu1 %v2411_v42 }
 0x183   :  { %2284 = vmatmul.mubr.msk.bf16.vlgmr.msra.gmra.mrb[0].mxu1 %vm3559_vm4, %v3558_v32 }
 0x184   :  { %2287 = vmatprep.mubr.msk.bf16.mxu1 %vm3561_vm7, %v3560_v44  ;;  %v2424_v44 = vld [vmem:[%s3476_s0 + $0x70] sm:$0xff] }
 0x18b   :  { %2288 = vmatmul.mubr.msk.bf16.gmra.mrb[4].mxu1 %vm3563_vm8, %v3562_v50 }
 0x18c   :  { %2291 = vmatprep.mubr.msk.bf16.mxu1 %vm3564_vm11, %v2000_v45  ;;  %v2415_v45 = vld [vmem:[%s3476_s0 + $0x8] sm:$0xff] }
 0x193   :  { %2292 = vmatmul.mubr.msk.bf16.gmra.mrb[8].mxu1 %vm2932_vm6, %v2003_v48  ;;  %v2420_v48 = vld [vmem:[%s3476_s0 + $0x50] sm:$0xff] }
 0x194   :  { %2295 = vmatprep.mubr.msk.bf16.mxu1 %vm2937_vm1, %v2006_v15 }
 0x19b   :  { %2296 = vmatmul.mubr.msk.bf16.gmra.mrb[12].mxu1 %vm3565_vm12, %v2009_v18 }
 0x256   :  { %v2285_v27 = vpop.f32.mrb[0].mxu1 }
 0x257   :  { %v1717_v16 = vadd.f32 %v2412_v61, %v2285_v27  ;;  %1765 = vst [vmem:[%s3479_s5 + $0x10] sm:$0xff] %v2285_v27  ;;  %v1636_v43 = vpop.f32.mrb[1].mxu1  ;;  %v2425_v61 = vld [vmem:[%s3476_s0 + $0x60] sm:$0xff] }
 0x258   :  { %v1715_v53 = vadd.f32 %v2413_v47, %v1636_v43  ;;  %1763 = vst [vmem:[%s3479_s5] sm:$0xff] %v1636_v43  ;;  %v2286_v41 = vpop.f32.mrb[2].mxu1 }
 0x259   :  { %v1733_v56 = vadd.f32 %v1717_v16, %v38_v52  ;;  %v1718_v5 = vadd.f32 %v2414_v4, %v2286_v41  ;;  %1766 = vst [vmem:[%s3479_s5 + $0x18] sm:$0xff] %v2286_v41  ;;  %v1639_v1 = vpop.f32.mrb[3].mxu1  ;;  %v48_v52 = vld [vmem:[%s3478_s1 + $0x60] sm:$0xff]  ;;  %v49_v41 = vld [vmem:[%s3478_s1 + $0x68] sm:$0xff] }
 0x25a   :  { %v1731_v57 = vadd.f32 %v1715_v53, %v36_v23  ;;  %v1716_v14 = vadd.f32 %v2415_v45, %v1639_v1  ;;  %1764 = vst [vmem:[%s3479_s5 + $0x8] sm:$0xff] %v1639_v1  ;;  %v51_v23 = vld [vmem:[%s3478_s1 + $0x78] sm:$0xff] }
 0x25b   :  { %1749 = vst [vmem:[%s3480_s4 + $0x10] sm:$0xff] %v1733_v56  ;;  %v1734_v59 = vadd.f32 %v1718_v5, %v39_v34  ;;  %v2426_v53 = vld [vmem:[%s3476_s0 + $0x78] sm:$0xff]  ;;  %v2427_v5 = vld [vmem:[%s3476_s0 + $0x68] sm:$0xff] }
 0x25c   :  { %1747 = vst [vmem:[%s3480_s4] sm:$0xff] %v1731_v57  ;;  %v1732_v0 = vadd.f32 %v1716_v14, %v37_v40 }
 0x25d   :  { %1750 = vst [vmem:[%s3480_s4 + $0x18] sm:$0xff] %v1734_v59 }
 0x25e   :  { %1748 = vst [vmem:[%s3480_s4 + $0x8] sm:$0xff] %v1732_v0  ;;  %v2289_v20 = vpop.f32.mrb[4].mxu1 }
 0x25f   :  { %v1721_v17 = vadd.f32 %v2416_v58, %v2289_v20  ;;  %1769 = vst [vmem:[%s3479_s5 + $0x30] sm:$0xff] %v2289_v20  ;;  %v1652_v62 = vpop.f32.mrb[5].mxu1 }
 0x260   :  { %v1719_v10 = vadd.f32 %v2417_v6, %v1652_v62  ;;  %1767 = vst [vmem:[%s3479_s5 + $0x20] sm:$0xff] %v1652_v62  ;;  %v2290_v49 = vpop.f32.mrb[6].mxu1 }
 0x261   :  { %v1737_v9 = vadd.f32 %v1721_v17, %v42_v12  ;;  %v1722_v13 = vadd.f32 %v2418_v21, %v2290_v49  ;;  %1770 = vst [vmem:[%s3479_s5 + $0x38] sm:$0xff] %v2290_v49  ;;  %v1655_v29 = vpop.f32.mrb[7].mxu1 }
 0x262   :  { %v1735_v11 = vadd.f32 %v1719_v10, %v40_v25  ;;  %v1720_v26 = vadd.f32 %v2419_v37, %v1655_v29  ;;  %1768 = vst [vmem:[%s3479_s5 + $0x28] sm:$0xff] %v1655_v29 }
 0x263   :  { %1753 = vst [vmem:[%s3480_s4 + $0x30] sm:$0xff] %v1737_v9  ;;  %v1738_v39 = vadd.f32 %v1722_v13, %v43_v30 }
 0x264   :  { %1751 = vst [vmem:[%s3480_s4 + $0x20] sm:$0xff] %v1735_v11  ;;  %v1736_v2 = vadd.f32 %v1720_v26, %v41_v35 }
 0x265   :  { %1754 = vst [vmem:[%s3480_s4 + $0x38] sm:$0xff] %v1738_v39 }
 0x266   :  { %1752 = vst [vmem:[%s3480_s4 + $0x28] sm:$0xff] %v1736_v2  ;;  %v2293_v63 = vpop.f32.mrb[8].mxu1 }
 0x267   :  { %v1725_v15 = vadd.f32 %v2420_v48, %v2293_v63  ;;  %1773 = vst [vmem:[%s3479_s5 + $0x50] sm:$0xff] %v2293_v63  ;;  %v1668_v19 = vpop.f32.mrb[9].mxu1 }
 0x268   :  { %v1723_v18 = vadd.f32 %v2421_v54, %v1668_v19  ;;  %1771 = vst [vmem:[%s3479_s5 + $0x40] sm:$0xff] %v1668_v19  ;;  %v2294_v28 = vpop.f32.mrb[10].mxu1 }
 0x269   :  { %v1741_v3 = vadd.f32 %v1725_v15, %v46_v8  ;;  %v1726_v31 = vadd.f32 %v2422_v33, %v2294_v28  ;;  %1774 = vst [vmem:[%s3479_s5 + $0x58] sm:$0xff] %v2294_v28  ;;  %v1671_v36 = vpop.f32.mrb[11].mxu1 }
 0x26a   :  { %v1739_v46 = vadd.f32 %v1723_v18, %v44_v51  ;;  %v1724_v55 = vadd.f32 %v2423_v38, %v1671_v36  ;;  %1772 = vst [vmem:[%s3479_s5 + $0x48] sm:$0xff] %v1671_v36 }
 0x26b   :  { %1757 = vst [vmem:[%s3480_s4 + $0x50] sm:$0xff] %v1741_v3  ;;  %v1742_v60 = vadd.f32 %v1726_v31, %v47_v7 }
 0x26c   :  { %1755 = vst [vmem:[%s3480_s4 + $0x40] sm:$0xff] %v1739_v46  ;;  %v1740_v42 = vadd.f32 %v1724_v55, %v45_v24 }
 0x26d   :  { %1758 = vst [vmem:[%s3480_s4 + $0x58] sm:$0xff] %v1742_v60 }
 0x26e   :  { %1756 = vst [vmem:[%s3480_s4 + $0x48] sm:$0xff] %v1740_v42  ;;  %v2297_v32 = vpop.f32.mrb[12].mxu1 }
 0x26f   :  { %v1729_v50 = vadd.f32 %v2424_v44, %v2297_v32  ;;  %1777 = vst [vmem:[%s3479_s5 + $0x70] sm:$0xff] %v2297_v32  ;;  %v1684_v27 = vpop.f32.mrb[13].mxu1 }
 0x270   :  { %v1727_v16 = vadd.f32 %v2425_v61, %v1684_v27  ;;  %1775 = vst [vmem:[%s3479_s5 + $0x60] sm:$0xff] %v1684_v27  ;;  %v2298_v43 = vpop.f32.mrb[14].mxu1 }
 0x271   :  { %v1745_v47 = vadd.f32 %v1729_v50, %v50_v22  ;;  %v1730_v34 = vadd.f32 %v2426_v53, %v2298_v43  ;;  %1778 = vst [vmem:[%s3479_s5 + $0x78] sm:$0xff] %v2298_v43  ;;  %v1687_v56 = vpop.f32.mrb[15].mxu1 }
 0x272   :  { %v1743_v4 = vadd.f32 %v1727_v16, %v48_v52  ;;  %v1728_v40 = vadd.f32 %v2427_v5, %v1687_v56  ;;  %1776 = vst [vmem:[%s3479_s5 + $0x68] sm:$0xff] %v1687_v56 }
 0x273   :  { %1761 = vst [vmem:[%s3480_s4 + $0x70] sm:$0xff] %v1745_v47  ;;  %v1746_v1 = vadd.f32 %v1730_v34, %v51_v23 }
 0x274   :  { %1759 = vst [vmem:[%s3480_s4 + $0x60] sm:$0xff] %v1743_v4  ;;  %v1744_v57 = vadd.f32 %v1728_v40, %v49_v41 }
 0x275   :  { %1762 = vst [vmem:[%s3480_s4 + $0x78] sm:$0xff] %v1746_v1 }
 0x276   :  { %1760 = vst [vmem:[%s3480_s4 + $0x68] sm:$0xff] %v1744_v57 }

</bundles_post_ra>
